<compile_context>
chip_gen: v5e
topology: v5e:2x2
jax: 0.10.0
libtpu: 0.0.40
codegen_flags: <defaults>
</compile_context>

<pallas_src>
import functools

import numpy as np
import jax
import jax.numpy as jnp
from jax import lax
from jax.experimental import pallas as pl
from jax.experimental.pallas import tpu as pltpu


_VMEM = pl.BlockSpec(memory_space=pltpu.MemorySpace.VMEM)


# ----------------------------- in-kernel helpers -----------------------------

def _fold_lane_groups(v, groups):
    """Sum `groups` equal-width lane blocks of a (1, groups*C) row -> (1, C)."""
    assert groups & (groups - 1) == 0, "groups must be a power of two"
    while groups > 1:
        half = v.shape[1] // 2
        v = v[:, :half] + v[:, half:]
        groups //= 2
    return v


def _tile_lanes(v, groups):
    """(1, C) -> (1, groups*C) by repetition (matches the lane-group layout)."""
    return jnp.concatenate([v] * groups, axis=1)


def _bn_relu_epilogue(acc, gamma, beta, groups, eps):
    """Training-mode BatchNorm2d (batch stats, biased variance) + ReLU applied to
    an (M, groups*C) f32 accumulator whose lanes are `groups` repeats of C
    channels (channel index minor)."""
    n = acc.shape[0] * groups
    colsum = jnp.sum(acc, axis=0, keepdims=True)            # (1, groups*C)
    colsq = jnp.sum(acc * acc, axis=0, keepdims=True)
    mean = _fold_lane_groups(colsum, groups) / n             # (1, C)
    var = jnp.maximum(_fold_lane_groups(colsq, groups) / n - mean * mean, 0.0)
    scale = gamma * lax.rsqrt(var + eps)
    shift = beta - mean * scale
    y = acc * _tile_lanes(scale, groups) + _tile_lanes(shift, groups)
    return jnp.maximum(y, 0.0)


# --------------------------------- kernels -----------------------------------

def _stem_kernel(z_ref, e_ref, wz_ref, we_ref, bz_ref, be_ref,
                 gz_ref, btz_ref, ge_ref, bte_ref, o_ref, *, eps):
    """deconv1_1 & deconv1_2 (1x1 spatial input -> direct matmuls) + BN + ReLU.
    Output lanes per branch are ordered (y, x, channel), 16 groups of C1."""
    def branch(x_ref, w_ref, b_ref, g_ref, bt_ref):
        acc = jnp.dot(x_ref[...], w_ref[...],
                      preferred_element_type=jnp.float32)    # (B, 16*C1)
        acc = acc + b_ref[...]                               # pre-tiled bias
        return _bn_relu_epilogue(acc, g_ref[...], bt_ref[...], 16, eps)

    xa = branch(z_ref, wz_ref, bz_ref, gz_ref, btz_ref)
    xb = branch(e_ref, we_ref, be_ref, ge_ref, bte_ref)
    o_ref[...] = jnp.concatenate([xa, xb], axis=1)


def _deconv_bn_relu_kernel(p_ref, w_ref, b_ref, g_ref, bt_ref, o_ref, *, eps):
    """One stride-2 ConvTranspose2d (zero-free phase patches -> one matmul),
    bias, BatchNorm + ReLU.  Output lanes are (phase, channel), 4 groups."""
    acc = jnp.dot(p_ref[...], w_ref[...],
                  preferred_element_type=jnp.float32)        # (M, 4*Cout)
    acc = acc + b_ref[...]
    o_ref[...] = _bn_relu_epilogue(acc, g_ref[...], bt_ref[...], 4, eps)


def _deconv_tanh_kernel(p_ref, w_ref, b_ref, o_ref):
    """Final stride-2 ConvTranspose2d + bias + tanh."""
    acc = jnp.dot(p_ref[...], w_ref[...], preferred_element_type=jnp.float32)
    o_ref[...] = jnp.tanh(acc + b_ref[...])


# --------------------------- XLA glue (tiny arrays) ---------------------------

def _phase_patches(a_nhwc):
    """(B, H, W, C) -> (B*H*W, 16*C) bf16 patch slab for a k=4, s=2, p=1
    transposed conv: for each of the 4 output phases, the 4 (2x2) non-zero taps.
    Column block (pidx*4 + ty*2 + tx) holds Apad[b, yo+py+ty, xo+px+tx, :]."""
    B, H, W, C = a_nhwc.shape
    a = a_nhwc.astype(jnp.bfloat16)
    ap = jnp.pad(a, ((0, 0), (1, 1), (1, 1), (0, 0)))
    blocks = []
    for py in range(2):
        for px in range(2):
            for ty in range(2):
                for tx in range(2):
                    blocks.append(ap[:, py + ty:py + ty + H, px + tx:px + tx + W, :])
    p = jnp.concatenate(blocks, axis=-1)                     # (B, H, W, 16*C)
    return p.reshape(B * H * W, 16 * C)


def _interleave_phases(o, B, H, W, c):
    """(B*H*W, 4*C) phase-major kernel output -> (B, 2H, 2W, C) NHWC."""
    o = o.reshape(B, H, W, 2, 2, c)
    o = jnp.transpose(o, (0, 1, 3, 2, 4, 5))
    return o.reshape(B, 2 * H, 2 * W, c)


# ------------------------------ layer wrappers --------------------------------

def _stem_layer(kp, z2d, e2d):
    B = z2d.shape[0]
    c1 = kp["g1_1"].shape[1]
    return pl.pallas_call(
        functools.partial(_stem_kernel, eps=1e-5),
        out_shape=jax.ShapeDtypeStruct((B, 32 * c1), jnp.float32),
        in_specs=[_VMEM] * 10,
        out_specs=_VMEM,
    )(z2d.astype(jnp.bfloat16), e2d.astype(jnp.bfloat16),
      kp["w1_1"], kp["w1_2"], kp["b1_1"], kp["b1_2"],
      kp["g1_1"], kp["bt1_1"], kp["g1_2"], kp["bt1_2"])


def _deconv_s2_bn_relu(kp, name, a_nhwc):
    B, H, W, _ = a_nhwc.shape
    w = kp["w" + name]
    n4 = w.shape[1]                                          # 4 * Cout
    patches = _phase_patches(a_nhwc)
    out = pl.pallas_call(
        functools.partial(_deconv_bn_relu_kernel, eps=1e-5),
        out_shape=jax.ShapeDtypeStruct((B * H * W, n4), jnp.float32),
        in_specs=[_VMEM] * 5,
        out_specs=_VMEM,
    )(patches, w, kp["b" + name], kp["g" + name], kp["bt" + name])
    return _interleave_phases(out, B, H, W, n4 // 4)


def _deconv_s2_tanh(kp, name, a_nhwc):
    B, H, W, _ = a_nhwc.shape
    w = kp["w" + name]
    n4 = w.shape[1]
    patches = _phase_patches(a_nhwc)
    out = pl.pallas_call(
        _deconv_tanh_kernel,
        out_shape=jax.ShapeDtypeStruct((B * H * W, n4), jnp.float32),
        in_specs=[_VMEM] * 3,
        out_specs=_VMEM,
    )(patches, w, kp["b" + name])
    return _interleave_phases(out, B, H, W, n4 // 4)


# ------------------------------ CDCGAN_G model --------------------------------

def cdcgan_g_forward(kparams, z_nchw, embed_nchw):
    """Exact forward of CDCGAN_G (training-mode BatchNorm).  NCHW in / NCHW out."""
    B = z_nchw.shape[0]
    c1 = kparams["g1_1"].shape[1]

    h = _stem_layer(kparams, z_nchw.reshape(B, -1), embed_nchw.reshape(B, -1))
    xa = h[:, :16 * c1].reshape(B, 4, 4, c1)                 # branch from z
    xb = h[:, 16 * c1:].reshape(B, 4, 4, c1)                 # branch from embed
    a = jnp.concatenate([xa, xb], axis=-1)                   # (B, 4, 4, 4*nf)

    a = _deconv_s2_bn_relu(kparams, "2", a)                  # (B, 8, 8, 2*nf)
    a = _deconv_s2_bn_relu(kparams, "3", a)                  # (B, 16, 16, nf)
    img = _deconv_s2_tanh(kparams, "4", a)                   # (B, 32, 32, 3)
    return jnp.transpose(img, (0, 3, 1, 2))                  # -> NCHW


# --------------------------- parameter init / prep ----------------------------

def init_params(key, z_dim, embed_dim, nf):
    """Deterministic init matching weight_init(mean=0, std=0.02): conv weights
    N(0, 0.02), conv biases 0, BatchNorm gamma=1 / beta=0 (PyTorch default).
    Weights kept in PyTorch ConvTranspose2d layout (Cin, Cout, k, k)."""
    def conv_t(k, cin, cout, ksz=4):
        return {"w": 0.02 * jax.random.normal(k, (cin, cout, ksz, ksz), jnp.float32),
                "b": jnp.zeros((cout,), jnp.float32)}
    ks = jax.random.split(key, 5)
    params = {
        "deconv1_1": conv_t(ks[0], z_dim, nf * 2),
        "deconv1_2": conv_t(ks[1], embed_dim, nf * 2),
        "deconv2": conv_t(ks[2], nf * 4, nf * 2),
        "deconv3": conv_t(ks[3], nf * 2, nf),
        "deconv4": conv_t(ks[4], nf, 3),
    }
    for name, c in [("bn1_1", nf * 2), ("bn1_2", nf * 2), ("bn2", nf * 2), ("bn3", nf)]:
        params[name] = {"gamma": jnp.ones((c,), jnp.float32),
                        "beta": jnp.zeros((c,), jnp.float32)}
    return params


def prepare_params(params):
    """One-time conversion of PyTorch-layout parameters into kernel layouts:
    bf16 matmul weights (direct for layer 1, per-phase block matrices for the
    stride-2 layers), lane-tiled biases, (1, C) BN affines."""
    kp = {}

    def stem(w, b):
        cin, cout = int(w.shape[0]), int(w.shape[1])
        # out[b, (y, x, co)] = sum_ci z[b, ci] * W[ci, co, y, x]
        wm = jnp.transpose(w, (0, 2, 3, 1)).reshape(cin, 16 * cout)
        bm = jnp.tile(b, 16).reshape(1, 16 * cout)
        return wm.astype(jnp.bfloat16), bm

    def phase(w, b):
        # Phase decomposition of k=4, s=2, p=1:  y = 2*yo + py reads padded input
        # rows yo + py + ty (ty in {0,1}) with kernel row ky = 3 - 2*ty - py.
        cin, cout = int(w.shape[0]), int(w.shape[1])
        wnp = np.asarray(w, np.float32)
        m = np.zeros((16 * cin, 4 * cout), np.float32)
        for py in range(2):
            for px in range(2):
                pidx = py * 2 + px
                for ty in range(2):
                    for tx in range(2):
                        tidx = ty * 2 + tx
                        ky = 3 - 2 * ty - py
                        kx = 3 - 2 * tx - px
                        r0 = (pidx * 4 + tidx) * cin
                        m[r0:r0 + cin, pidx * cout:(pidx + 1) * cout] = wnp[:, :, ky, kx]
        bm = jnp.tile(b, 4).reshape(1, 4 * cout)
        return jnp.asarray(m, jnp.bfloat16), bm

    kp["w1_1"], kp["b1_1"] = stem(params["deconv1_1"]["w"], params["deconv1_1"]["b"])
    kp["w1_2"], kp["b1_2"] = stem(params["deconv1_2"]["w"], params["deconv1_2"]["b"])
    for name in ("2", "3", "4"):
        kp["w" + name], kp["b" + name] = phase(params["deconv" + name]["w"],
                                               params["deconv" + name]["b"])
    for src, dst in (("bn1_1", "1_1"), ("bn1_2", "1_2"), ("bn2", "2"), ("bn3", "3")):
        kp["g" + dst] = params[src]["gamma"].reshape(1, -1)
        kp["bt" + dst] = params[src]["beta"].reshape(1, -1)
    return kp


# ---------------------------- plain-JAX reference -----------------------------

def _ref_deconv(x, w, b, s, p):
    k = w.shape[2]
    rhs = jnp.transpose(jnp.flip(w, (2, 3)), (1, 0, 2, 3))   # (Cout, Cin, k, k)
    out = lax.conv_general_dilated(
        x, rhs, window_strides=(1, 1),
        padding=[(k - 1 - p, k - 1 - p)] * 2,
        lhs_dilation=(s, s),
        dimension_numbers=("NCHW", "OIHW", "NCHW"))
    return out + b.reshape(1, -1, 1, 1)


def _ref_bn_relu(x, g, bt, eps=1e-5):
    mean = x.mean(axis=(0, 2, 3), keepdims=True)
    var = jnp.square(x - mean).mean(axis=(0, 2, 3), keepdims=True)
    xn = (x - mean) / jnp.sqrt(var + eps)
    return jnp.maximum(xn * g.reshape(1, -1, 1, 1) + bt.reshape(1, -1, 1, 1), 0.0)


def reference_forward(params, z, embed):
    x = _ref_bn_relu(_ref_deconv(z, params["deconv1_1"]["w"], params["deconv1_1"]["b"], 1, 0),
                     params["bn1_1"]["gamma"], params["bn1_1"]["beta"])
    y = _ref_bn_relu(_ref_deconv(embed, params["deconv1_2"]["w"], params["deconv1_2"]["b"], 1, 0),
                     params["bn1_2"]["gamma"], params["bn1_2"]["beta"])
    h = jnp.concatenate([x, y], axis=1)
    h = _ref_bn_relu(_ref_deconv(h, params["deconv2"]["w"], params["deconv2"]["b"], 2, 1),
                     params["bn2"]["gamma"], params["bn2"]["beta"])
    h = _ref_bn_relu(_ref_deconv(h, params["deconv3"]["w"], params["deconv3"]["b"], 2, 1),
                     params["bn3"]["gamma"], params["bn3"]["beta"])
    return jnp.tanh(_ref_deconv(h, params["deconv4"]["w"], params["deconv4"]["b"], 2, 1))


# ------------------------------------ main ------------------------------------

if __name__ == "__main__":
    # Small shapes consistent with the module: z (B, z_dim, 1, 1), embed (B, embed_dim, 1, 1).
    B, Z_DIM, EMBED_DIM, NF = 2, 8, 4, 8

    key = jax.random.PRNGKey(0)
    kp, kz, ke = jax.random.split(key, 3)
    params = init_params(kp, Z_DIM, EMBED_DIM, NF)
    kparams = prepare_params(params)                 # one-time weight re-layout
    z = jax.random.normal(kz, (B, Z_DIM, 1, 1), jnp.float32)
    embed = jax.random.normal(ke, (B, EMBED_DIM, 1, 1), jnp.float32)

    out = jax.jit(cdcgan_g_forward)(kparams, z, embed)
    out = jax.block_until_ready(out)
    assert out.shape == (B, 3, 32, 32), out.shape

    ref = jax.block_until_ready(reference_forward(params, z, embed))
    # Tolerance covers explicit bf16 MXU operands (f32 accumulation) vs. the
    # XLA reference, which itself runs at TPU-default (bf16-class) precision.
    np.testing.assert_allclose(np.asarray(out), np.asarray(ref), atol=3e-2, rtol=3e-2)

    print("KERNEL_OK")
</pallas_src>

<mosaic_0001>
module attributes {stable_mosaic.version = 11 : i64} {
  func.func @_stem_kernel(%arg0: memref<2x8xbf16, #tpu.memory_space<vmem>>, %arg1: memref<2x4xbf16, #tpu.memory_space<vmem>>, %arg2: memref<8x256xbf16, #tpu.memory_space<vmem>>, %arg3: memref<4x256xbf16, #tpu.memory_space<vmem>>, %arg4: memref<1x256xf32, #tpu.memory_space<vmem>>, %arg5: memref<1x256xf32, #tpu.memory_space<vmem>>, %arg6: memref<1x16xf32, #tpu.memory_space<vmem>>, %arg7: memref<1x16xf32, #tpu.memory_space<vmem>>, %arg8: memref<1x16xf32, #tpu.memory_space<vmem>>, %arg9: memref<1x16xf32, #tpu.memory_space<vmem>>, %arg10: memref<2x512xf32, #tpu.memory_space<vmem>>) attributes {dimension_semantics = [], scalar_prefetch = 0 : i64, scratch_operands = 0 : i64, tpu.core_type = #tpu.core_type<tc>} {
    %c0 = arith.constant 0 : index
    %c0_0 = arith.constant 0 : index
    %0 = vector.load %arg0[%c0, %c0_0] : memref<2x8xbf16, #tpu.memory_space<vmem>>, vector<2x8xbf16>
    %c0_1 = arith.constant 0 : index
    %c0_2 = arith.constant 0 : index
    %1 = vector.load %arg2[%c0_1, %c0_2] : memref<8x256xbf16, #tpu.memory_space<vmem>>, vector<8x256xbf16>
    %cst = arith.constant dense<0.000000e+00> : vector<2x256xf32>
    %2 = tpu.matmul %0, %1, %cst {dimension_numbers = #tpu.dot_dimension_numbers<[1], [0], [0], [1], [0, 0, 1, 1], [], []>} : vector<2x8xbf16>, vector<8x256xbf16>, vector<2x256xf32> -> vector<2x256xf32>
    %c0_3 = arith.constant 0 : index
    %c0_4 = arith.constant 0 : index
    %3 = vector.load %arg4[%c0_3, %c0_4] : memref<1x256xf32, #tpu.memory_space<vmem>>, vector<1x256xf32>
    %4 = vector.broadcast %3 : vector<1x256xf32> to vector<2x256xf32>
    %5 = arith.addf %2, %4 : vector<2x256xf32>
    %c0_5 = arith.constant 0 : index
    %c0_6 = arith.constant 0 : index
    %6 = vector.load %arg6[%c0_5, %c0_6] : memref<1x16xf32, #tpu.memory_space<vmem>>, vector<1x16xf32>
    %c0_7 = arith.constant 0 : index
    %c0_8 = arith.constant 0 : index
    %7 = vector.load %arg7[%c0_7, %c0_8] : memref<1x16xf32, #tpu.memory_space<vmem>>, vector<1x16xf32>
    %cst_9 = arith.constant dense<0.000000e+00> : vector<256xf32>
    %8 = vector.multi_reduction <add>, %5, %cst_9 [0] : vector<2x256xf32> to vector<256xf32>
    %9 = vector.shape_cast %8 : vector<256xf32> to vector<1x256xf32>
    %10 = arith.mulf %5, %5 : vector<2x256xf32>
    %cst_10 = arith.constant dense<0.000000e+00> : vector<256xf32>
    %11 = vector.multi_reduction <add>, %10, %cst_10 [0] : vector<2x256xf32> to vector<256xf32>
    %12 = vector.shape_cast %11 : vector<256xf32> to vector<1x256xf32>
    %13 = vector.extract_strided_slice %9 {offsets = [0, 0], sizes = [1, 128], strides = [1, 1]} : vector<1x256xf32> to vector<1x128xf32>
    %14 = vector.extract_strided_slice %9 {offsets = [0, 128], sizes = [1, 128], strides = [1, 1]} : vector<1x256xf32> to vector<1x128xf32>
    %15 = arith.addf %13, %14 : vector<1x128xf32>
    %16 = vector.extract_strided_slice %15 {offsets = [0, 0], sizes = [1, 64], strides = [1, 1]} : vector<1x128xf32> to vector<1x64xf32>
    %17 = vector.extract_strided_slice %15 {offsets = [0, 64], sizes = [1, 64], strides = [1, 1]} : vector<1x128xf32> to vector<1x64xf32>
    %18 = arith.addf %16, %17 : vector<1x64xf32>
    %19 = vector.extract_strided_slice %18 {offsets = [0, 0], sizes = [1, 32], strides = [1, 1]} : vector<1x64xf32> to vector<1x32xf32>
    %20 = vector.extract_strided_slice %18 {offsets = [0, 32], sizes = [1, 32], strides = [1, 1]} : vector<1x64xf32> to vector<1x32xf32>
    %21 = arith.addf %19, %20 : vector<1x32xf32>
    %22 = vector.extract_strided_slice %21 {offsets = [0, 0], sizes = [1, 16], strides = [1, 1]} : vector<1x32xf32> to vector<1x16xf32>
    %23 = vector.extract_strided_slice %21 {offsets = [0, 16], sizes = [1, 16], strides = [1, 1]} : vector<1x32xf32> to vector<1x16xf32>
    %24 = arith.addf %22, %23 : vector<1x16xf32>
    %cst_11 = arith.constant 3.200000e+01 : f32
    %25 = vector.broadcast %cst_11 : f32 to vector<1x16xf32>
    %26 = arith.divf %24, %25 : vector<1x16xf32>
    %27 = vector.extract_strided_slice %12 {offsets = [0, 0], sizes = [1, 128], strides = [1, 1]} : vector<1x256xf32> to vector<1x128xf32>
    %28 = vector.extract_strided_slice %12 {offsets = [0, 128], sizes = [1, 128], strides = [1, 1]} : vector<1x256xf32> to vector<1x128xf32>
    %29 = arith.addf %27, %28 : vector<1x128xf32>
    %30 = vector.extract_strided_slice %29 {offsets = [0, 0], sizes = [1, 64], strides = [1, 1]} : vector<1x128xf32> to vector<1x64xf32>
    %31 = vector.extract_strided_slice %29 {offsets = [0, 64], sizes = [1, 64], strides = [1, 1]} : vector<1x128xf32> to vector<1x64xf32>
    %32 = arith.addf %30, %31 : vector<1x64xf32>
    %33 = vector.extract_strided_slice %32 {offsets = [0, 0], sizes = [1, 32], strides = [1, 1]} : vector<1x64xf32> to vector<1x32xf32>
    %34 = vector.extract_strided_slice %32 {offsets = [0, 32], sizes = [1, 32], strides = [1, 1]} : vector<1x64xf32> to vector<1x32xf32>
    %35 = arith.addf %33, %34 : vector<1x32xf32>
    %36 = vector.extract_strided_slice %35 {offsets = [0, 0], sizes = [1, 16], strides = [1, 1]} : vector<1x32xf32> to vector<1x16xf32>
    %37 = vector.extract_strided_slice %35 {offsets = [0, 16], sizes = [1, 16], strides = [1, 1]} : vector<1x32xf32> to vector<1x16xf32>
    %38 = arith.addf %36, %37 : vector<1x16xf32>
    %cst_12 = arith.constant 3.200000e+01 : f32
    %39 = vector.broadcast %cst_12 : f32 to vector<1x16xf32>
    %40 = arith.divf %38, %39 : vector<1x16xf32>
    %41 = arith.mulf %26, %26 : vector<1x16xf32>
    %42 = arith.subf %40, %41 : vector<1x16xf32>
    %cst_13 = arith.constant 0.000000e+00 : f32
    %43 = vector.broadcast %cst_13 : f32 to vector<1x16xf32>
    %44 = arith.maximumf %42, %43 : vector<1x16xf32>
    %cst_14 = arith.constant 9.99999974E-6 : f32
    %45 = vector.broadcast %cst_14 : f32 to vector<1x16xf32>
    %46 = arith.addf %44, %45 : vector<1x16xf32>
    %47 = math.rsqrt %46 : vector<1x16xf32>
    %48 = arith.mulf %6, %47 : vector<1x16xf32>
    %49 = arith.mulf %26, %48 : vector<1x16xf32>
    %50 = arith.subf %7, %49 : vector<1x16xf32>
    %51 = tpu.concatenate %48, %48, %48, %48, %48, %48, %48, %48, %48, %48, %48, %48, %48, %48, %48, %48 in 1 : vector<1x16xf32>, vector<1x16xf32>, vector<1x16xf32>, vector<1x16xf32>, vector<1x16xf32>, vector<1x16xf32>, vector<1x16xf32>, vector<1x16xf32>, vector<1x16xf32>, vector<1x16xf32>, vector<1x16xf32>, vector<1x16xf32>, vector<1x16xf32>, vector<1x16xf32>, vector<1x16xf32>, vector<1x16xf32> -> vector<1x256xf32>
    %52 = vector.broadcast %51 : vector<1x256xf32> to vector<2x256xf32>
    %53 = arith.mulf %5, %52 : vector<2x256xf32>
    %54 = tpu.concatenate %50, %50, %50, %50, %50, %50, %50, %50, %50, %50, %50, %50, %50, %50, %50, %50 in 1 : vector<1x16xf32>, vector<1x16xf32>, vector<1x16xf32>, vector<1x16xf32>, vector<1x16xf32>, vector<1x16xf32>, vector<1x16xf32>, vector<1x16xf32>, vector<1x16xf32>, vector<1x16xf32>, vector<1x16xf32>, vector<1x16xf32>, vector<1x16xf32>, vector<1x16xf32>, vector<1x16xf32>, vector<1x16xf32> -> vector<1x256xf32>
    %55 = vector.broadcast %54 : vector<1x256xf32> to vector<2x256xf32>
    %56 = arith.addf %53, %55 : vector<2x256xf32>
    %cst_15 = arith.constant 0.000000e+00 : f32
    %57 = vector.broadcast %cst_15 : f32 to vector<2x256xf32>
    %58 = arith.maximumf %56, %57 : vector<2x256xf32>
    %c0_16 = arith.constant 0 : index
    %c0_17 = arith.constant 0 : index
    %59 = vector.load %arg1[%c0_16, %c0_17] : memref<2x4xbf16, #tpu.memory_space<vmem>>, vector<2x4xbf16>
    %c0_18 = arith.constant 0 : index
    %c0_19 = arith.constant 0 : index
    %60 = vector.load %arg3[%c0_18, %c0_19] : memref<4x256xbf16, #tpu.memory_space<vmem>>, vector<4x256xbf16>
    %cst_20 = arith.constant dense<0.000000e+00> : vector<2x256xf32>
    %61 = tpu.matmul %59, %60, %cst_20 {dimension_numbers = #tpu.dot_dimension_numbers<[1], [0], [0], [1], [0, 0, 1, 1], [], []>} : vector<2x4xbf16>, vector<4x256xbf16>, vector<2x256xf32> -> vector<2x256xf32>
    %c0_21 = arith.constant 0 : index
    %c0_22 = arith.constant 0 : index
    %62 = vector.load %arg5[%c0_21, %c0_22] : memref<1x256xf32, #tpu.memory_space<vmem>>, vector<1x256xf32>
    %63 = vector.broadcast %62 : vector<1x256xf32> to vector<2x256xf32>
    %64 = arith.addf %61, %63 : vector<2x256xf32>
    %c0_23 = arith.constant 0 : index
    %c0_24 = arith.constant 0 : index
    %65 = vector.load %arg8[%c0_23, %c0_24] : memref<1x16xf32, #tpu.memory_space<vmem>>, vector<1x16xf32>
    %c0_25 = arith.constant 0 : index
    %c0_26 = arith.constant 0 : index
    %66 = vector.load %arg9[%c0_25, %c0_26] : memref<1x16xf32, #tpu.memory_space<vmem>>, vector<1x16xf32>
    %cst_27 = arith.constant dense<0.000000e+00> : vector<256xf32>
    %67 = vector.multi_reduction <add>, %64, %cst_27 [0] : vector<2x256xf32> to vector<256xf32>
    %68 = vector.shape_cast %67 : vector<256xf32> to vector<1x256xf32>
    %69 = arith.mulf %64, %64 : vector<2x256xf32>
    %cst_28 = arith.constant dense<0.000000e+00> : vector<256xf32>
    %70 = vector.multi_reduction <add>, %69, %cst_28 [0] : vector<2x256xf32> to vector<256xf32>
    %71 = vector.shape_cast %70 : vector<256xf32> to vector<1x256xf32>
    %72 = vector.extract_strided_slice %68 {offsets = [0, 0], sizes = [1, 128], strides = [1, 1]} : vector<1x256xf32> to vector<1x128xf32>
    %73 = vector.extract_strided_slice %68 {offsets = [0, 128], sizes = [1, 128], strides = [1, 1]} : vector<1x256xf32> to vector<1x128xf32>
    %74 = arith.addf %72, %73 : vector<1x128xf32>
    %75 = vector.extract_strided_slice %74 {offsets = [0, 0], sizes = [1, 64], strides = [1, 1]} : vector<1x128xf32> to vector<1x64xf32>
    %76 = vector.extract_strided_slice %74 {offsets = [0, 64], sizes = [1, 64], strides = [1, 1]} : vector<1x128xf32> to vector<1x64xf32>
    %77 = arith.addf %75, %76 : vector<1x64xf32>
    %78 = vector.extract_strided_slice %77 {offsets = [0, 0], sizes = [1, 32], strides = [1, 1]} : vector<1x64xf32> to vector<1x32xf32>
    %79 = vector.extract_strided_slice %77 {offsets = [0, 32], sizes = [1, 32], strides = [1, 1]} : vector<1x64xf32> to vector<1x32xf32>
    %80 = arith.addf %78, %79 : vector<1x32xf32>
    %81 = vector.extract_strided_slice %80 {offsets = [0, 0], sizes = [1, 16], strides = [1, 1]} : vector<1x32xf32> to vector<1x16xf32>
    %82 = vector.extract_strided_slice %80 {offsets = [0, 16], sizes = [1, 16], strides = [1, 1]} : vector<1x32xf32> to vector<1x16xf32>
    %83 = arith.addf %81, %82 : vector<1x16xf32>
    %cst_29 = arith.constant 3.200000e+01 : f32
    %84 = vector.broadcast %cst_29 : f32 to vector<1x16xf32>
    %85 = arith.divf %83, %84 : vector<1x16xf32>
    %86 = vector.extract_strided_slice %71 {offsets = [0, 0], sizes = [1, 128], strides = [1, 1]} : vector<1x256xf32> to vector<1x128xf32>
    %87 = vector.extract_strided_slice %71 {offsets = [0, 128], sizes = [1, 128], strides = [1, 1]} : vector<1x256xf32> to vector<1x128xf32>
    %88 = arith.addf %86, %87 : vector<1x128xf32>
    %89 = vector.extract_strided_slice %88 {offsets = [0, 0], sizes = [1, 64], strides = [1, 1]} : vector<1x128xf32> to vector<1x64xf32>
    %90 = vector.extract_strided_slice %88 {offsets = [0, 64], sizes = [1, 64], strides = [1, 1]} : vector<1x128xf32> to vector<1x64xf32>
    %91 = arith.addf %89, %90 : vector<1x64xf32>
    %92 = vector.extract_strided_slice %91 {offsets = [0, 0], sizes = [1, 32], strides = [1, 1]} : vector<1x64xf32> to vector<1x32xf32>
    %93 = vector.extract_strided_slice %91 {offsets = [0, 32], sizes = [1, 32], strides = [1, 1]} : vector<1x64xf32> to vector<1x32xf32>
    %94 = arith.addf %92, %93 : vector<1x32xf32>
    %95 = vector.extract_strided_slice %94 {offsets = [0, 0], sizes = [1, 16], strides = [1, 1]} : vector<1x32xf32> to vector<1x16xf32>
    %96 = vector.extract_strided_slice %94 {offsets = [0, 16], sizes = [1, 16], strides = [1, 1]} : vector<1x32xf32> to vector<1x16xf32>
    %97 = arith.addf %95, %96 : vector<1x16xf32>
    %cst_30 = arith.constant 3.200000e+01 : f32
    %98 = vector.broadcast %cst_30 : f32 to vector<1x16xf32>
    %99 = arith.divf %97, %98 : vector<1x16xf32>
    %100 = arith.mulf %85, %85 : vector<1x16xf32>
    %101 = arith.subf %99, %100 : vector<1x16xf32>
    %cst_31 = arith.constant 0.000000e+00 : f32
    %102 = vector.broadcast %cst_31 : f32 to vector<1x16xf32>
    %103 = arith.maximumf %101, %102 : vector<1x16xf32>
    %cst_32 = arith.constant 9.99999974E-6 : f32
    %104 = vector.broadcast %cst_32 : f32 to vector<1x16xf32>
    %105 = arith.addf %103, %104 : vector<1x16xf32>
    %106 = math.rsqrt %105 : vector<1x16xf32>
    %107 = arith.mulf %65, %106 : vector<1x16xf32>
    %108 = arith.mulf %85, %107 : vector<1x16xf32>
    %109 = arith.subf %66, %108 : vector<1x16xf32>
    %110 = tpu.concatenate %107, %107, %107, %107, %107, %107, %107, %107, %107, %107, %107, %107, %107, %107, %107, %107 in 1 : vector<1x16xf32>, vector<1x16xf32>, vector<1x16xf32>, vector<1x16xf32>, vector<1x16xf32>, vector<1x16xf32>, vector<1x16xf32>, vector<1x16xf32>, vector<1x16xf32>, vector<1x16xf32>, vector<1x16xf32>, vector<1x16xf32>, vector<1x16xf32>, vector<1x16xf32>, vector<1x16xf32>, vector<1x16xf32> -> vector<1x256xf32>
    %111 = vector.broadcast %110 : vector<1x256xf32> to vector<2x256xf32>
    %112 = arith.mulf %64, %111 : vector<2x256xf32>
    %113 = tpu.concatenate %109, %109, %109, %109, %109, %109, %109, %109, %109, %109, %109, %109, %109, %109, %109, %109 in 1 : vector<1x16xf32>, vector<1x16xf32>, vector<1x16xf32>, vector<1x16xf32>, vector<1x16xf32>, vector<1x16xf32>, vector<1x16xf32>, vector<1x16xf32>, vector<1x16xf32>, vector<1x16xf32>, vector<1x16xf32>, vector<1x16xf32>, vector<1x16xf32>, vector<1x16xf32>, vector<1x16xf32>, vector<1x16xf32> -> vector<1x256xf32>
    %114 = vector.broadcast %113 : vector<1x256xf32> to vector<2x256xf32>
    %115 = arith.addf %112, %114 : vector<2x256xf32>
    %cst_33 = arith.constant 0.000000e+00 : f32
    %116 = vector.broadcast %cst_33 : f32 to vector<2x256xf32>
    %117 = arith.maximumf %115, %116 : vector<2x256xf32>
    %118 = tpu.concatenate %58, %117 in 1 : vector<2x256xf32>, vector<2x256xf32> -> vector<2x512xf32>
    %c0_34 = arith.constant 0 : index
    %c0_35 = arith.constant 0 : index
    %119 = vector.load %arg10[%c0_34, %c0_35] : memref<2x512xf32, #tpu.memory_space<vmem>>, vector<2x512xf32>
    tpu.vector_store %arg10[%c0_34, %c0_35], %118 {strides = array<i32>} : memref<2x512xf32, #tpu.memory_space<vmem>>, vector<2x512xf32>,
    return
  }
}

module attributes {stable_mosaic.version = 11 : i64} {
  func.func @_deconv_bn_relu_kernel(%arg0: memref<32x512xbf16, #tpu.memory_space<vmem>>, %arg1: memref<512x64xbf16, #tpu.memory_space<vmem>>, %arg2: memref<1x64xf32, #tpu.memory_space<vmem>>, %arg3: memref<1x16xf32, #tpu.memory_space<vmem>>, %arg4: memref<1x16xf32, #tpu.memory_space<vmem>>, %arg5: memref<32x64xf32, #tpu.memory_space<vmem>>) attributes {dimension_semantics = [], scalar_prefetch = 0 : i64, scratch_operands = 0 : i64, tpu.core_type = #tpu.core_type<tc>} {
    %c0 = arith.constant 0 : index
    %c0_0 = arith.constant 0 : index
    %0 = vector.load %arg0[%c0, %c0_0] : memref<32x512xbf16, #tpu.memory_space<vmem>>, vector<32x512xbf16>
    %c0_1 = arith.constant 0 : index
    %c0_2 = arith.constant 0 : index
    %1 = vector.load %arg1[%c0_1, %c0_2] : memref<512x64xbf16, #tpu.memory_space<vmem>>, vector<512x64xbf16>
    %cst = arith.constant dense<0.000000e+00> : vector<32x64xf32>
    %2 = tpu.matmul %0, %1, %cst {dimension_numbers = #tpu.dot_dimension_numbers<[1], [0], [0], [1], [0, 0, 1, 1], [], []>} : vector<32x512xbf16>, vector<512x64xbf16>, vector<32x64xf32> -> vector<32x64xf32>
    %c0_3 = arith.constant 0 : index
    %c0_4 = arith.constant 0 : index
    %3 = vector.load %arg2[%c0_3, %c0_4] : memref<1x64xf32, #tpu.memory_space<vmem>>, vector<1x64xf32>
    %4 = vector.broadcast %3 : vector<1x64xf32> to vector<32x64xf32>
    %5 = arith.addf %2, %4 : vector<32x64xf32>
    %c0_5 = arith.constant 0 : index
    %c0_6 = arith.constant 0 : index
    %6 = vector.load %arg3[%c0_5, %c0_6] : memref<1x16xf32, #tpu.memory_space<vmem>>, vector<1x16xf32>
    %c0_7 = arith.constant 0 : index
    %c0_8 = arith.constant 0 : index
    %7 = vector.load %arg4[%c0_7, %c0_8] : memref<1x16xf32, #tpu.memory_space<vmem>>, vector<1x16xf32>
    %cst_9 = arith.constant dense<0.000000e+00> : vector<64xf32>
    %8 = vector.multi_reduction <add>, %5, %cst_9 [0] : vector<32x64xf32> to vector<64xf32>
    %9 = vector.shape_cast %8 : vector<64xf32> to vector<1x64xf32>
    %10 = arith.mulf %5, %5 : vector<32x64xf32>
    %cst_10 = arith.constant dense<0.000000e+00> : vector<64xf32>
    %11 = vector.multi_reduction <add>, %10, %cst_10 [0] : vector<32x64xf32> to vector<64xf32>
    %12 = vector.shape_cast %11 : vector<64xf32> to vector<1x64xf32>
    %13 = vector.extract_strided_slice %9 {offsets = [0, 0], sizes = [1, 32], strides = [1, 1]} : vector<1x64xf32> to vector<1x32xf32>
    %14 = vector.extract_strided_slice %9 {offsets = [0, 32], sizes = [1, 32], strides = [1, 1]} : vector<1x64xf32> to vector<1x32xf32>
    %15 = arith.addf %13, %14 : vector<1x32xf32>
    %16 = vector.extract_strided_slice %15 {offsets = [0, 0], sizes = [1, 16], strides = [1, 1]} : vector<1x32xf32> to vector<1x16xf32>
    %17 = vector.extract_strided_slice %15 {offsets = [0, 16], sizes = [1, 16], strides = [1, 1]} : vector<1x32xf32> to vector<1x16xf32>
    %18 = arith.addf %16, %17 : vector<1x16xf32>
    %cst_11 = arith.constant 1.280000e+02 : f32
    %19 = vector.broadcast %cst_11 : f32 to vector<1x16xf32>
    %20 = arith.divf %18, %19 : vector<1x16xf32>
    %21 = vector.extract_strided_slice %12 {offsets = [0, 0], sizes = [1, 32], strides = [1, 1]} : vector<1x64xf32> to vector<1x32xf32>
    %22 = vector.extract_strided_slice %12 {offsets = [0, 32], sizes = [1, 32], strides = [1, 1]} : vector<1x64xf32> to vector<1x32xf32>
    %23 = arith.addf %21, %22 : vector<1x32xf32>
    %24 = vector.extract_strided_slice %23 {offsets = [0, 0], sizes = [1, 16], strides = [1, 1]} : vector<1x32xf32> to vector<1x16xf32>
    %25 = vector.extract_strided_slice %23 {offsets = [0, 16], sizes = [1, 16], strides = [1, 1]} : vector<1x32xf32> to vector<1x16xf32>
    %26 = arith.addf %24, %25 : vector<1x16xf32>
    %cst_12 = arith.constant 1.280000e+02 : f32
    %27 = vector.broadcast %cst_12 : f32 to vector<1x16xf32>
    %28 = arith.divf %26, %27 : vector<1x16xf32>
    %29 = arith.mulf %20, %20 : vector<1x16xf32>
    %30 = arith.subf %28, %29 : vector<1x16xf32>
    %cst_13 = arith.constant 0.000000e+00 : f32
    %31 = vector.broadcast %cst_13 : f32 to vector<1x16xf32>
    %32 = arith.maximumf %30, %31 : vector<1x16xf32>
    %cst_14 = arith.constant 9.99999974E-6 : f32
    %33 = vector.broadcast %cst_14 : f32 to vector<1x16xf32>
    %34 = arith.addf %32, %33 : vector<1x16xf32>
    %35 = math.rsqrt %34 : vector<1x16xf32>
    %36 = arith.mulf %6, %35 : vector<1x16xf32>
    %37 = arith.mulf %20, %36 : vector<1x16xf32>
    %38 = arith.subf %7, %37 : vector<1x16xf32>
    %39 = tpu.concatenate %36, %36, %36, %36 in 1 : vector<1x16xf32>, vector<1x16xf32>, vector<1x16xf32>, vector<1x16xf32> -> vector<1x64xf32>
    %40 = vector.broadcast %39 : vector<1x64xf32> to vector<32x64xf32>
    %41 = arith.mulf %5, %40 : vector<32x64xf32>
    %42 = tpu.concatenate %38, %38, %38, %38 in 1 : vector<1x16xf32>, vector<1x16xf32>, vector<1x16xf32>, vector<1x16xf32> -> vector<1x64xf32>
    %43 = vector.broadcast %42 : vector<1x64xf32> to vector<32x64xf32>
    %44 = arith.addf %41, %43 : vector<32x64xf32>
    %cst_15 = arith.constant 0.000000e+00 : f32
    %45 = vector.broadcast %cst_15 : f32 to vector<32x64xf32>
    %46 = arith.maximumf %44, %45 : vector<32x64xf32>
    %c0_16 = arith.constant 0 : index
    %c0_17 = arith.constant 0 : index
    %47 = vector.load %arg5[%c0_16, %c0_17] : memref<32x64xf32, #tpu.memory_space<vmem>>, vector<32x64xf32>
    tpu.vector_store %arg5[%c0_16, %c0_17], %46 {strides = array<i32>} : memref<32x64xf32, #tpu.memory_space<vmem>>, vector<32x64xf32>,
    return
  }
}

module attributes {stable_mosaic.version = 11 : i64} {
  func.func @_deconv_bn_relu_kernel(%arg0: memref<128x256xbf16, #tpu.memory_space<vmem>>, %arg1: memref<256x32xbf16, #tpu.memory_space<vmem>>, %arg2: memref<1x32xf32, #tpu.memory_space<vmem>>, %arg3: memref<1x8xf32, #tpu.memory_space<vmem>>, %arg4: memref<1x8xf32, #tpu.memory_space<vmem>>, %arg5: memref<128x32xf32, #tpu.memory_space<vmem>>) attributes {dimension_semantics = [], scalar_prefetch = 0 : i64, scratch_operands = 0 : i64, tpu.core_type = #tpu.core_type<tc>} {
    %c0 = arith.constant 0 : index
    %c0_0 = arith.constant 0 : index
    %0 = vector.load %arg0[%c0, %c0_0] : memref<128x256xbf16, #tpu.memory_space<vmem>>, vector<128x256xbf16>
    %c0_1 = arith.constant 0 : index
    %c0_2 = arith.constant 0 : index
    %1 = vector.load %arg1[%c0_1, %c0_2] : memref<256x32xbf16, #tpu.memory_space<vmem>>, vector<256x32xbf16>
    %cst = arith.constant dense<0.000000e+00> : vector<128x32xf32>
    %2 = tpu.matmul %0, %1, %cst {dimension_numbers = #tpu.dot_dimension_numbers<[1], [0], [0], [1], [0, 0, 1, 1], [], []>} : vector<128x256xbf16>, vector<256x32xbf16>, vector<128x32xf32> -> vector<128x32xf32>
    %c0_3 = arith.constant 0 : index
    %c0_4 = arith.constant 0 : index
    %3 = vector.load %arg2[%c0_3, %c0_4] : memref<1x32xf32, #tpu.memory_space<vmem>>, vector<1x32xf32>
    %4 = vector.broadcast %3 : vector<1x32xf32> to vector<128x32xf32>
    %5 = arith.addf %2, %4 : vector<128x32xf32>
    %c0_5 = arith.constant 0 : index
    %c0_6 = arith.constant 0 : index
    %6 = vector.load %arg3[%c0_5, %c0_6] : memref<1x8xf32, #tpu.memory_space<vmem>>, vector<1x8xf32>
    %c0_7 = arith.constant 0 : index
    %c0_8 = arith.constant 0 : index
    %7 = vector.load %arg4[%c0_7, %c0_8] : memref<1x8xf32, #tpu.memory_space<vmem>>, vector<1x8xf32>
    %cst_9 = arith.constant dense<0.000000e+00> : vector<32xf32>
    %8 = vector.multi_reduction <add>, %5, %cst_9 [0] : vector<128x32xf32> to vector<32xf32>
    %9 = vector.shape_cast %8 : vector<32xf32> to vector<1x32xf32>
    %10 = arith.mulf %5, %5 : vector<128x32xf32>
    %cst_10 = arith.constant dense<0.000000e+00> : vector<32xf32>
    %11 = vector.multi_reduction <add>, %10, %cst_10 [0] : vector<128x32xf32> to vector<32xf32>
    %12 = vector.shape_cast %11 : vector<32xf32> to vector<1x32xf32>
    %13 = vector.extract_strided_slice %9 {offsets = [0, 0], sizes = [1, 16], strides = [1, 1]} : vector<1x32xf32> to vector<1x16xf32>
    %14 = vector.extract_strided_slice %9 {offsets = [0, 16], sizes = [1, 16], strides = [1, 1]} : vector<1x32xf32> to vector<1x16xf32>
    %15 = arith.addf %13, %14 : vector<1x16xf32>
    %16 = vector.extract_strided_slice %15 {offsets = [0, 0], sizes = [1, 8], strides = [1, 1]} : vector<1x16xf32> to vector<1x8xf32>
    %17 = vector.extract_strided_slice %15 {offsets = [0, 8], sizes = [1, 8], strides = [1, 1]} : vector<1x16xf32> to vector<1x8xf32>
    %18 = arith.addf %16, %17 : vector<1x8xf32>
    %cst_11 = arith.constant 5.120000e+02 : f32
    %19 = vector.broadcast %cst_11 : f32 to vector<1x8xf32>
    %20 = arith.divf %18, %19 : vector<1x8xf32>
    %21 = vector.extract_strided_slice %12 {offsets = [0, 0], sizes = [1, 16], strides = [1, 1]} : vector<1x32xf32> to vector<1x16xf32>
    %22 = vector.extract_strided_slice %12 {offsets = [0, 16], sizes = [1, 16], strides = [1, 1]} : vector<1x32xf32> to vector<1x16xf32>
    %23 = arith.addf %21, %22 : vector<1x16xf32>
    %24 = vector.extract_strided_slice %23 {offsets = [0, 0], sizes = [1, 8], strides = [1, 1]} : vector<1x16xf32> to vector<1x8xf32>
    %25 = vector.extract_strided_slice %23 {offsets = [0, 8], sizes = [1, 8], strides = [1, 1]} : vector<1x16xf32> to vector<1x8xf32>
    %26 = arith.addf %24, %25 : vector<1x8xf32>
    %cst_12 = arith.constant 5.120000e+02 : f32
    %27 = vector.broadcast %cst_12 : f32 to vector<1x8xf32>
    %28 = arith.divf %26, %27 : vector<1x8xf32>
    %29 = arith.mulf %20, %20 : vector<1x8xf32>
    %30 = arith.subf %28, %29 : vector<1x8xf32>
    %cst_13 = arith.constant 0.000000e+00 : f32
    %31 = vector.broadcast %cst_13 : f32 to vector<1x8xf32>
    %32 = arith.maximumf %30, %31 : vector<1x8xf32>
    %cst_14 = arith.constant 9.99999974E-6 : f32
    %33 = vector.broadcast %cst_14 : f32 to vector<1x8xf32>
    %34 = arith.addf %32, %33 : vector<1x8xf32>
    %35 = math.rsqrt %34 : vector<1x8xf32>
    %36 = arith.mulf %6, %35 : vector<1x8xf32>
    %37 = arith.mulf %20, %36 : vector<1x8xf32>
    %38 = arith.subf %7, %37 : vector<1x8xf32>
    %39 = tpu.concatenate %36, %36, %36, %36 in 1 : vector<1x8xf32>, vector<1x8xf32>, vector<1x8xf32>, vector<1x8xf32> -> vector<1x32xf32>
    %40 = vector.broadcast %39 : vector<1x32xf32> to vector<128x32xf32>
    %41 = arith.mulf %5, %40 : vector<128x32xf32>
    %42 = tpu.concatenate %38, %38, %38, %38 in 1 : vector<1x8xf32>, vector<1x8xf32>, vector<1x8xf32>, vector<1x8xf32> -> vector<1x32xf32>
    %43 = vector.broadcast %42 : vector<1x32xf32> to vector<128x32xf32>
    %44 = arith.addf %41, %43 : vector<128x32xf32>
    %cst_15 = arith.constant 0.000000e+00 : f32
    %45 = vector.broadcast %cst_15 : f32 to vector<128x32xf32>
    %46 = arith.maximumf %44, %45 : vector<128x32xf32>
    %c0_16 = arith.constant 0 : index
    %c0_17 = arith.constant 0 : index
    %47 = vector.load %arg5[%c0_16, %c0_17] : memref<128x32xf32, #tpu.memory_space<vmem>>, vector<128x32xf32>
    tpu.vector_store %arg5[%c0_16, %c0_17], %46 {strides = array<i32>} : memref<128x32xf32, #tpu.memory_space<vmem>>, vector<128x32xf32>,
    return
  }
}

module attributes {stable_mosaic.version = 11 : i64} {
  func.func @_deconv_tanh_kernel(%arg0: memref<512x128xbf16, #tpu.memory_space<vmem>>, %arg1: memref<128x12xbf16, #tpu.memory_space<vmem>>, %arg2: memref<1x12xf32, #tpu.memory_space<vmem>>, %arg3: memref<512x12xf32, #tpu.memory_space<vmem>>) attributes {dimension_semantics = [], scalar_prefetch = 0 : i64, scratch_operands = 0 : i64, tpu.core_type = #tpu.core_type<tc>} {
    %c0 = arith.constant 0 : index
    %c0_0 = arith.constant 0 : index
    %0 = vector.load %arg0[%c0, %c0_0] : memref<512x128xbf16, #tpu.memory_space<vmem>>, vector<512x128xbf16>
    %c0_1 = arith.constant 0 : index
    %c0_2 = arith.constant 0 : index
    %1 = vector.load %arg1[%c0_1, %c0_2] : memref<128x12xbf16, #tpu.memory_space<vmem>>, vector<128x12xbf16>
    %cst = arith.constant dense<0.000000e+00> : vector<512x12xf32>
    %2 = tpu.matmul %0, %1, %cst {dimension_numbers = #tpu.dot_dimension_numbers<[1], [0], [0], [1], [0, 0, 1, 1], [], []>} : vector<512x128xbf16>, vector<128x12xbf16>, vector<512x12xf32> -> vector<512x12xf32>
    %c0_3 = arith.constant 0 : index
    %c0_4 = arith.constant 0 : index
    %3 = vector.load %arg2[%c0_3, %c0_4] : memref<1x12xf32, #tpu.memory_space<vmem>>, vector<1x12xf32>
    %4 = vector.broadcast %3 : vector<1x12xf32> to vector<512x12xf32>
    %5 = arith.addf %2, %4 : vector<512x12xf32>
    %6 = math.tanh %5 : vector<512x12xf32>
    %c0_5 = arith.constant 0 : index
    %c0_6 = arith.constant 0 : index
    %7 = vector.load %arg3[%c0_5, %c0_6] : memref<512x12xf32, #tpu.memory_space<vmem>>, vector<512x12xf32>
    tpu.vector_store %arg3[%c0_5, %c0_6], %6 {strides = array<i32>} : memref<512x12xf32, #tpu.memory_space<vmem>>, vector<512x12xf32>,
    return
  }
}

</mosaic_0001>

<bundles_post_ra>
// kernel: cdcgan_g_forward.4
= control target key start
LH: loop header
LB: loop body
LE: loop exit
PB: predicated region body
PF: predicated region fallthrough
CT: control target
= control target key end

     0   :  { %15 = vsyncpa [#allocation3], 0  ;;  %s1036_s0 = inlined_call_operand.vmem [shape: bf16[2,8], index: 0, kind: input, shape index: {}]   ;;  %s1037_s1 = inlined_call_operand.vmem [shape: bf16[2,4], index: 1, kind: input, shape index: {}]   ;;  %s1038_s2 = inlined_call_operand.hbm [shape: bf16[8,256], index: 2, kind: input, shape index: {}]   ;;  %s1039_s3 = inlined_call_operand.hbm [shape: bf16[4,256], index: 3, kind: input, shape index: {}]   ;;  %s1040_s4 = inlined_call_operand.hbm [shape: f32[1,256], index: 4, kind: input, shape index: {}]   ;;  %s1041_s5 = inlined_call_operand.hbm [shape: f32[1,256], index: 5, kind: input, shape index: {}]   ;;  %s1042_s6 = inlined_call_operand.hbm [shape: f32[1,16], index: 6, kind: input, shape index: {}]   ;;  %s1043_s7 = inlined_call_operand.hbm [shape: f32[1,16], index: 7, kind: input, shape index: {}]   ;;  %s1044_s8 = inlined_call_operand.hbm [shape: f32[1,16], index: 8, kind: input, shape index: {}]   ;;  %s1045_s9 = inlined_call_operand.hbm [shape: f32[1,16], index: 9, kind: input, shape index: {}]   ;;  %s1046_s10 = inlined_call_operand.vmem [shape: f32[2,512], index: 10, kind: output, shape index: {}]  }
   0x1   :  { %16 = vsyncpa [#allocation5], 0 }
   0x2   :  { %17 = vsyncpa [#allocation8], 0 }
   0x3   :  { %18 = vsyncpa [#allocation11], 0  ;;  %s40_s15 = sshll.u32 %s1039_s3, 4  ;;  %s41_s15 = int_to_ptr.hbm [resolvable:$true] %s40_s15 }
   0x4   :  { %19 = vsyncpa [#allocation14], 0  ;;  %s808_s16 = smov [#allocation4]   ;;  %s62_s20 = sshll.u32 %s1041_s5, 4  ;;  %s63_s20 = int_to_ptr.hbm [resolvable:$true] %s62_s20 }
   0x5   :  { %s42_s17 = sshll.u32 %s808_s16, 4  ;;  %s809_s21 = smov [#allocation7]   ;;  %s43_s17 = int_to_ptr.vmem [resolvable:$true] %s42_s17 }
   0x6   :  { %45 = dma.hbm_to_vmem [thread:$0]  %s41_s15, 64, %s43_s17, [#allocation5]  }
   0x7   :  { %s64_s22 = sshll.u32 %s809_s21, 4  ;;  %s84_s25 = sshll.u32 %s1043_s7, 4  ;;  %s65_s22 = int_to_ptr.vmem [resolvable:$true] %s64_s22  ;;  %s85_s25 = int_to_ptr.hbm [resolvable:$true] %s84_s25 }
   0x8   :  { %67 = dma.hbm_to_vmem [thread:$0]  %s63_s20, 32, %s65_s22, [#allocation8]  }
   0x9   :  { %s29_s27 = sshll.u32 %s1038_s2, 4  ;;  %s810_s28 = smov [#allocation10]   ;;  %s30_s27 = int_to_ptr.hbm [resolvable:$true] %s29_s27 }
   0xa   :  { %s86_s29 = sshll.u32 %s810_s28, 4  ;;  %s811_s5 = smov [#allocation2]   ;;  %s87_s29 = int_to_ptr.vmem [resolvable:$true] %s86_s29 }
   0xb   :  { %89 = dma.hbm_to_vmem [thread:$0]  %s85_s25, 16, %s87_s29, [#allocation11]  }
   0xc   :  { %s31_s30 = sshll.u32 %s811_s5, 4  ;;  %s51_s13 = sshll.u32 %s1040_s4, 4  ;;  %s32_s30 = int_to_ptr.vmem [resolvable:$true] %s31_s30  ;;  %s52_s13 = int_to_ptr.hbm [resolvable:$true] %s51_s13 }
   0xd   :  { %34 = dma.hbm_to_vmem [thread:$0]  %s30_s27, 128, %s32_s30, [#allocation3]  }
   0xe   :  { %s73_s15 = sshll.u32 %s1042_s6, 4  ;;  %s812_s16 = smov [#allocation6]   ;;  %s74_s15 = int_to_ptr.hbm [resolvable:$true] %s73_s15 }
   0xf   :  { %s53_s2 = sshll.u32 %s812_s16, 4  ;;  %s813_s17 = smov [#allocation9]   ;;  %s54_s2 = int_to_ptr.vmem [resolvable:$true] %s53_s2 }
  0x10   :  { %56 = dma.hbm_to_vmem [thread:$0]  %s52_s13, 32, %s54_s2, [#allocation5]  }
  0x11   :  { %s75_s18 = sshll.u32 %s813_s17, 4  ;;  %s95_s21 = sshll.u32 %s1044_s8, 4  ;;  %s76_s18 = int_to_ptr.vmem [resolvable:$true] %s75_s18  ;;  %s96_s21 = int_to_ptr.hbm [resolvable:$true] %s95_s21 }
  0x12   :  { %78 = dma.hbm_to_vmem [thread:$0]  %s74_s15, 16, %s76_s18, [#allocation8]  }
  0x13   :  { %s106_s23 = sshll.u32 %s1045_s9, 4  ;;  %s814_s24 = smov [#allocation12]   ;;  %s107_s23 = int_to_ptr.hbm [resolvable:$true] %s106_s23 }
  0x14   :  { %s97_s6 = sshll.u32 %s814_s24, 4  ;;  %s815_s25 = smov [#allocation13]   ;;  %s98_s6 = int_to_ptr.vmem [resolvable:$true] %s97_s6 }
  0x15   :  { %100 = dma.hbm_to_vmem [thread:$0]  %s96_s21, 16, %s98_s6, [#allocation11]  }
  0x16   :  { %s108_s3 = sshll.u32 %s815_s25, 4  ;;  %s109_s3 = int_to_ptr.vmem [resolvable:$true] %s108_s3 }
  0x17   :  { %111 = dma.hbm_to_vmem [thread:$0]  %s107_s23, 16, %s109_s3, [#allocation14]  }
  0x18   :  { %798 = dma.done.wait [#allocation3], 128  }
  0x19   :  { %799 = vsyncadd [#allocation3], 4294967168 }
  0x1a   :  { %800 = dma.done.wait [#allocation5], 96  }
  0x1b   :  { %801 = vsyncadd [#allocation5], 4294967200 }
  0x1c   :  { %802 = dma.done.wait [#allocation8], 48  }
  0x1d   :  { %803 = vsyncadd [#allocation8], 4294967248 }
  0x1e   :  { %804 = dma.done.wait [#allocation11], 32  }
  0x1f   :  { %805 = vsyncadd [#allocation11], 4294967264 }
  0x20   :  { %806 = dma.done.wait [#allocation14], 16  }
  0x21   :  { %807 = vsyncadd [#allocation14], 4294967280  ;;  %v146_v0 = vld [vmem:[#allocation2] sm:$0xff]  ;;  %v362_v1 = vld [vmem:[#allocation4] sm:$0xf]  ;;  %vm162_vm0 = vcmask 1043456  }
  0x22   :  { %v154_v2 = vunpack.c.l.b16 %v146_v0  ;;  %v155_v3 = vunpack.c.h.b16 %v146_v0  ;;  %370 = vst [vmem:[#allocation1] ss:$4 sm:$0xff] %v362_v1  ;;  %v145_v8 = vld [vmem:[%s1036_s0] sm:$0x1]  ;;  %vm158_vm1 = vcmask 64512   ;;  %vm197_vm2 = vcmask 1041408  }
  0x23   :  { %v361_v13 = vld [vmem:[%s1037_s1] sm:$0x1]  ;;  %vm373_vm3 = vcmask 31744   ;;  %v147_v14 = vld [vmem:[#allocation6] sm:$0x3]  ;;  %s816_s0 = smov 64  }
  0x24   :  { %v156_v4 = vpack.c.b16 %v154_v2, %v154_v2  ;;  %v157_v5 = vpack.c.b16 %v155_v3, %v155_v3  ;;  %v149_v15 = vperm.slane %v147_v14, 0  ;;  %v150_v16 = vperm.slane %v147_v14, 1  ;;  %v363_v27 = vld [vmem:[#allocation7] sm:$0x3]  ;;  %s817_s1 = smov 96   ;;  %s818_s28 = smov 112  }
  0x25   :  { %v365_v34 = vperm.slane %v363_v27, 0  ;;  %v366_v35 = vperm.slane %v363_v27, 1  ;;  %s820_s29 = smov 48   ;;  %s821_s5 = smov 32   ;;  %vm309_vm11 = vcmask 130048   ;;  %vm311_vm12 = vcmask 261120  }
  0x26   :  { %v164_v6 = vsel %vm162_vm0, %v156_v4, 0  ;;  %v167_v7 = vsel %vm162_vm0, %v157_v5, 0  ;;  %s822_s30 = smov 16   ;;  %s823_s11 = smov 80   ;;  %vm313_vm13 = vcmask 392192   ;;  %vm315_vm14 = vcmask 523264  }
  0x27   :  { %176 = vmatpush.bf16.msra.mxu0 %v164_v6  ;;  %189 = vmatpush.bf16.msra.mxu1 %v167_v7  ;;  %vm317_vm15 = vcmask 654336  }
  0x29   :  { %v371_v9 = vld.sshfl [vmem:[#allocation1] sm:$0xff pattern:$0x73625140]  ;;  %v372_v10 = vld.sshfl [vmem:[#allocation1 + $0x8] sm:$0xff pattern:$0x73625140] }
  0x2a   :  { %580 = vmatmul.msk.bf16.vlgmr.msra.gmra.mxu0 %vm158_vm1, %v145_v8  ;;  %581 = vmatmul.msk.bf16.vlgmr.msra.gmra.mxu1 %vm158_vm1, %v145_v8  ;;  %v377_v11 = vsel %vm197_vm2, %v371_v9, 0  ;;  %v379_v12 = vsel %vm197_vm2, %v372_v10, 0  ;;  %vm319_vm1 = vcmask 785408  }
  0x2b   :  { %388 = vmatpush.bf16.msra.mxu2 %v377_v11  ;;  %401 = vmatpush.bf16.msra.mxu3 %v379_v12 }
  0x2e   :  { %582 = vmatmul.msk.bf16.vlgmr.msra.gmra.mxu2 %vm373_vm3, %v361_v13  ;;  %583 = vmatmul.msk.bf16.vlgmr.msra.gmra.mxu3 %vm373_vm3, %v361_v13  ;;  %vm321_vm3 = vcmask 916480  }
  0xa7   :  { %v178_v17 = vpop.f32.mrf.mxu0  ;;  %v191_v18 = vpop.f32.mrf.mxu1 }
  0xa8   :  { %v913_v19 = vadd.f32 %v178_v17, %v149_v15  ;;  %v915_v20 = vadd.f32 %v191_v18, %v150_v16 }
  0xaa   :  { %v198_v21 = vsel %vm197_vm2, %v913_v19, 0.0  ;;  %v212_v22 = vmul.f32 %v913_v19, %v913_v19  ;;  %v205_v23 = vsel %vm197_vm2, %v915_v20, 0.0  ;;  %v213_v24 = vmul.f32 %v915_v20, %v915_v20 }
  0xab   :  { %v199_v25 = vrot.slane %v198_v21, 4  ;;  %v206_v26 = vrot.slane %v205_v23, 4 }
  0xac   :  { %v214_v28 = vsel %vm197_vm2, %v212_v22, 0.0  ;;  %v221_v29 = vsel %vm197_vm2, %v213_v24, 0.0 }
  0xad   :  { %v200_v30 = vadd.f32 %v199_v25, %v198_v21  ;;  %v215_v31 = vrot.slane %v214_v28, 4  ;;  %v207_v32 = vadd.f32 %v206_v26, %v205_v23  ;;  %v222_v33 = vrot.slane %v221_v29, 4 }
  0xaf   :  { %v180_v36 = vpop.f32.mrf.mxu0  ;;  %v193_v37 = vpop.f32.mrf.mxu1  ;;  %v201_v38 = vrot.slane %v200_v30, 2  ;;  %v208_v39 = vrot.slane %v207_v32, 2  ;;  %v216_v40 = vadd.f32 %v215_v31, %v214_v28  ;;  %v223_v41 = vadd.f32 %v222_v33, %v221_v29 }
  0xb1   :  { %v390_v42 = vpop.f32.mrf.mxu2  ;;  %v403_v43 = vpop.f32.mrf.mxu3  ;;  %v202_v44 = vadd.f32 %v201_v38, %v200_v30  ;;  %v209_v45 = vadd.f32 %v208_v39, %v207_v32  ;;  %v217_v46 = vrot.slane %v216_v40, 2  ;;  %v224_v47 = vrot.slane %v223_v41, 2 }
  0xb2   :  { %v927_v48 = vadd.f32 %v390_v42, %v365_v34  ;;  %v929_v49 = vadd.f32 %v403_v43, %v366_v35 }
  0xb3   :  { %v203_v50 = vrot.slane %v202_v44, 1  ;;  %v210_v51 = vrot.slane %v209_v45, 1  ;;  %v218_v52 = vadd.f32 %v217_v46, %v216_v40  ;;  %v225_v53 = vadd.f32 %v224_v47, %v223_v41 }
  0xb4   :  { %v409_v54 = vsel %vm197_vm2, %v927_v48, 0.0  ;;  %v423_v55 = vmul.f32 %v927_v48, %v927_v48  ;;  %v416_v56 = vsel %vm197_vm2, %v929_v49, 0.0  ;;  %v424_v57 = vmul.f32 %v929_v49, %v929_v49 }
  0xb5   :  { %v410_v58 = vrot.slane %v409_v54, 4  ;;  %v417_v59 = vrot.slane %v416_v56, 4  ;;  %v204_v60 = vadd.f32 %v203_v50, %v202_v44  ;;  %v211_v61 = vadd.f32 %v210_v51, %v209_v45 }
  0xb6   :  { %v425_v62 = vsel %vm197_vm2, %v423_v55, 0.0  ;;  %v432_v63 = vsel %vm197_vm2, %v424_v57, 0.0  ;;  %v219_v0 = vrot.slane %v218_v52, 1  ;;  %v226_v1 = vrot.slane %v225_v53, 1 }
  0xb7   :  { %v411_v2 = vadd.f32 %v410_v58, %v409_v54  ;;  %v426_v3 = vrot.slane %v425_v62, 4  ;;  %v418_v4 = vadd.f32 %v417_v59, %v416_v56  ;;  %v433_v5 = vrot.slane %v432_v63, 4 }
  0xb8   :  { %v228_v6 = vadd.f32 %v211_v61, %v204_v60  ;;  %v220_v7 = vadd.f32 %v219_v0, %v218_v52  ;;  %v227_v8 = vadd.f32 %v226_v1, %v225_v53  ;;  %v819_v52 = vmov 32.0  }
  0xb9   :  { %v412_v9 = vrot.slane %v411_v2, 2  ;;  %v427_v10 = vadd.f32 %v426_v3, %v425_v62  ;;  %v419_v11 = vrot.slane %v418_v4, 2  ;;  %v434_v12 = vadd.f32 %v433_v5, %v432_v63  ;;  %v392_v13 = vpop.f32.mrf.mxu2  ;;  %v405_v14 = vpop.f32.mrf.mxu3 }
  0xba   :  { %230 = vrot.lane.b32.xlu0 %v228_v6, %s816_s0  ;;  %v252_v15 = vadd.f32 %v227_v8, %v220_v7  ;;  %600 = vrcp.f32 %v819_v52 }
  0xbb   :  { %v413_v16 = vadd.f32 %v412_v9, %v411_v2  ;;  %v420_v17 = vadd.f32 %v419_v11, %v418_v4  ;;  %v428_v18 = vrot.slane %v427_v10, 2  ;;  %v435_v21 = vrot.slane %v434_v12, 2 }
  0xbc   :  { %254 = vrot.lane.b32.xlu1 %v252_v15, %s816_s0 }
  0xbd   :  { %v414_v22 = vrot.slane %v413_v16, 1  ;;  %v421_v23 = vrot.slane %v420_v17, 1  ;;  %v429_v24 = vadd.f32 %v428_v18, %v427_v10  ;;  %v436_v25 = vadd.f32 %v435_v21, %v434_v12 }
  0xbf   :  { %v415_v26 = vadd.f32 %v414_v22, %v413_v16  ;;  %v422_v27 = vadd.f32 %v421_v23, %v420_v17  ;;  %v430_v28 = vrot.slane %v429_v24, 1  ;;  %v437_v29 = vrot.slane %v436_v25, 1  ;;  %v195_v23 = vld [vmem:[#allocation9] sm:$0x1] }
  0xc0   :  { %v601_v53 = vpop.eup %600 }
  0xc1   :  { %v439_v30 = vadd.f32 %v422_v27, %v415_v26  ;;  %v431_v31 = vadd.f32 %v430_v28, %v429_v24  ;;  %v438_v32 = vadd.f32 %v437_v29, %v436_v25  ;;  %v245_v54 = vmul.f32 32.0, %v601_v53 }
  0xc2   :  { %vm249_vm4 = vweird.f32 %v601_v53 }
  0xc3   :  { %441 = vrot.lane.b32.xlu0 %v439_v30, %s816_s0  ;;  %v456_v33 = vadd.f32 %v438_v32, %v431_v31  ;;  %v246_v55 = vsub.f32 1.0, %v245_v54 }
  0xc5   :  { %458 = vrot.lane.b32.xlu1 %v456_v33, %s816_s0  ;;  %v247_v56 = vmul.f32 %v601_v53, %v246_v55 }
  0xc7   :  { %v248_v58 = vadd.f32 %v601_v53, %v247_v56 }
  0xc9   :  { %v250_v62 = vsel %vm249_vm4, %v601_v53, %v248_v58  ;;  %vm566_vm4 = vcmask 1045508  }
 0x12c   :  { %v231_v34 = vpop.permute.xlu0 %230 }
 0x12d   :  { %v233_v35 = vadd.f32 %v231_v34, %v228_v6 }
 0x12e   :  { %v255_v36 = vpop.permute.xlu1 %254 }
 0x12f   :  { %v257_v37 = vadd.f32 %v255_v36, %v252_v15  ;;  %235 = vrot.lane.b32.xlu2 %v233_v35, %s817_s1 }
 0x131   :  { %259 = vrot.lane.b32.xlu0 %v257_v37, %s817_s1 }
 0x135   :  { %v442_v38 = vpop.permute.xlu0 %441 }
 0x136   :  { %v444_v39 = vadd.f32 %v442_v38, %v439_v30 }
 0x137   :  { %v459_v40 = vpop.permute.xlu1 %458 }
 0x138   :  { %v461_v41 = vadd.f32 %v459_v40, %v456_v33  ;;  %446 = vrot.lane.b32.xlu2 %v444_v39, %s817_s1  ;;  %v196_v33 = vld [vmem:[#allocation10] sm:$0x1] }
 0x13a   :  { %463 = vrot.lane.b32.xlu1 %v461_v41, %s817_s1 }
 0x189   :  { %v236_v42 = vpop.permute.xlu2 %235 }
 0x18a   :  { %v238_v43 = vadd.f32 %v236_v42, %v233_v35  ;;  %v408_v42 = vld [vmem:[#allocation13] sm:$0x1] }
 0x18c   :  { %240 = vrot.lane.b32.xlu2 %v238_v43, %s818_s28 }
 0x192   :  { %v447_v44 = vpop.permute.xlu2 %446 }
 0x193   :  { %v449_v45 = vadd.f32 %v447_v44, %v444_v39 }
 0x195   :  { %451 = vrot.lane.b32.xlu0 %v449_v45, %s818_s28 }
 0x1a3   :  { %v260_v46 = vpop.permute.xlu0 %259 }
 0x1a4   :  { %v262_v47 = vadd.f32 %v260_v46, %v257_v37  ;;  %v407_v37 = vld [vmem:[#allocation12] sm:$0x1] }
 0x1a6   :  { %264 = vrot.lane.b32.xlu1 %v262_v47, %s818_s28 }
 0x1ac   :  { %v464_v50 = vpop.permute.xlu1 %463 }
 0x1ad   :  { %v466_v51 = vadd.f32 %v464_v50, %v461_v41 }
 0x1af   :  { %468 = vrot.lane.b32.xlu2 %v466_v51, %s818_s28 }
 0x1e6   :  { %v241_v57 = vpop.permute.xlu2 %240 }
 0x1e7   :  { %v243_v60 = vadd.f32 %v241_v57, %v238_v43 }
 0x1e9   :  { %v251_v0 = vmul.f32 %v250_v62, %v243_v60 }
 0x1eb   :  { %v269_v5 = vmul.f32 %v251_v0, %v251_v0 }
 0x207   :  { %v452_v59 = vpop.permute.xlu0 %451 }
 0x208   :  { %v454_v61 = vadd.f32 %v452_v59, %v449_v45 }
 0x209   :  { %v469_v63 = vpop.permute.xlu2 %468 }
 0x20a   :  { %v455_v1 = vmul.f32 %v454_v61, %v250_v62  ;;  %v471_v2 = vadd.f32 %v469_v63, %v466_v51 }
 0x20c   :  { %v473_v6 = vmul.f32 %v455_v1, %v455_v1  ;;  %v472_v7 = vmul.f32 %v471_v2, %v250_v62 }
 0x20e   :  { %v474_v10 = vsub.f32 %v472_v7, %v473_v6 }
 0x210   :  { %v475_v13 = vmax.f32 %v474_v10, 0.0 }
 0x212   :  { %v476_v14 = vadd.f32 1e-05, %v475_v13 }
 0x214   :  { %vm483_vm9 = vweird.f32 %v476_v14 }
 0x218   :  { %v265_v3 = vpop.permute.xlu1 %264 }
 0x219   :  { %v267_v4 = vadd.f32 %v265_v3, %v262_v47 }
 0x21b   :  { %v268_v8 = vmul.f32 %v267_v4, %v250_v62 }
 0x21d   :  { %v270_v9 = vsub.f32 %v268_v8, %v269_v5 }
 0x21f   :  { %v271_v11 = vmax.f32 %v270_v9, 0.0 }
 0x221   :  { %v272_v12 = vadd.f32 1e-05, %v271_v11 }
 0x223   :  { %602 = vrsqrt.f32 %v272_v12  ;;  %vm279_vm6 = vweird.f32 %v272_v12 }
 0x224   :  { %604 = vrsqrt.f32 %v476_v14 }
 0x229   :  { %v603_v15 = vpop.eup %602 }
 0x22a   :  { %v274_v16 = vmul.f32 %v603_v15, %v272_v12  ;;  %vm280_vm5 = vweird.f32 %v603_v15  ;;  %v605_v22 = vpop.eup %604 }
 0x22b   :  { %vm281_vm7 = vmor %vm279_vm6, %vm280_vm5  ;;  %v478_v25 = vmul.f32 %v605_v22, %v476_v14  ;;  %vm484_vm8 = vweird.f32 %v605_v22 }
 0x22c   :  { %v275_v17 = vmul.f32 %v603_v15, %v274_v16  ;;  %vm485_vm10 = vmor %vm483_vm9, %vm484_vm8 }
 0x22d   :  { %v479_v29 = vmul.f32 %v605_v22, %v478_v25 }
 0x22e   :  { %v276_v18 = vmul.f32 0.5, %v275_v17 }
 0x22f   :  { %v480_v30 = vmul.f32 0.5, %v479_v29 }
 0x230   :  { %v277_v21 = vsub.f32 1.5, %v276_v18 }
 0x231   :  { %v481_v32 = vsub.f32 1.5, %v480_v30 }
 0x232   :  { %v278_v24 = vmul.f32 %v603_v15, %v277_v21 }
 0x233   :  { %v482_v35 = vmul.f32 %v605_v22, %v481_v32 }
 0x234   :  { %v282_v26 = vsel %vm281_vm7, %v603_v15, %v278_v24 }
 0x235   :  { %v953_v27 = vmul.f32 %v282_v26, %v195_v23  ;;  %v486_v38 = vsel %vm485_vm10, %v605_v22, %v482_v35 }
 0x236   :  { %v969_v39 = vmul.f32 %v486_v38, %v407_v37 }
 0x237   :  { %v287_v28 = vperm.slane %v953_v27, 0  ;;  %v284_v31 = vmul.f32 %v953_v27, %v251_v0 }
 0x238   :  { %v488_v40 = vmul.f32 %v969_v39, %v455_v1  ;;  %v491_v41 = vperm.slane %v969_v39, 0 }
 0x239   :  { %294 = vrot.lane.b32.xlu2 %v287_v28, %s820_s29  ;;  %291 = vrot.lane.b32.xlu1 %v287_v28, %s821_s5  ;;  %v963_v34 = vsub.f32 %v196_v33, %v284_v31 }
 0x23a   :  { %288 = vrot.lane.b32.xlu0 %v287_v28, %s822_s30  ;;  %v976_v43 = vsub.f32 %v408_v42, %v488_v40 }
 0x23b   :  { %v327_v36 = vperm.slane %v963_v34, 0 }
 0x23c   :  { %v524_v44 = vperm.slane %v976_v43, 0 }
 0x241   :  { %303 = vrot.lane.b32.xlu2 %v287_v28, %s817_s1  ;;  %300 = vrot.lane.b32.xlu1 %v287_v28, %s823_s11 }
 0x242   :  { %297 = vrot.lane.b32.xlu0 %v287_v28, %s816_s0 }
 0x249   :  { %331 = vrot.lane.b32.xlu2 %v327_v36, %s821_s5  ;;  %328 = vrot.lane.b32.xlu1 %v327_v36, %s822_s30 }
 0x24a   :  { %306 = vrot.lane.b32.xlu0 %v287_v28, %s818_s28 }
 0x251   :  { %498 = vrot.lane.b32.xlu2 %v491_v41, %s820_s29  ;;  %495 = vrot.lane.b32.xlu1 %v491_v41, %s821_s5 }
 0x252   :  { %334 = vrot.lane.b32.xlu0 %v327_v36, %s820_s29 }
 0x259   :  { %501 = vrot.lane.b32.xlu1 %v491_v41, %s816_s0  ;;  %528 = vrot.lane.b32.xlu2 %v524_v44, %s821_s5 }
 0x25a   :  { %337 = vrot.lane.b32.xlu0 %v327_v36, %s816_s0 }
 0x261   :  { %504 = vrot.lane.b32.xlu1 %v491_v41, %s823_s11  ;;  %531 = vrot.lane.b32.xlu2 %v524_v44, %s820_s29 }
 0x262   :  { %340 = vrot.lane.b32.xlu0 %v327_v36, %s823_s11 }
 0x269   :  { %507 = vrot.lane.b32.xlu1 %v491_v41, %s817_s1  ;;  %534 = vrot.lane.b32.xlu2 %v524_v44, %s816_s0 }
 0x26a   :  { %343 = vrot.lane.b32.xlu0 %v327_v36, %s817_s1 }
 0x271   :  { %510 = vrot.lane.b32.xlu1 %v491_v41, %s818_s28  ;;  %537 = vrot.lane.b32.xlu2 %v524_v44, %s823_s11 }
 0x272   :  { %492 = vrot.lane.b32.xlu0 %v491_v41, %s822_s30 }
 0x279   :  { %540 = vrot.lane.b32.xlu1 %v524_v44, %s817_s1  ;;  %346 = vrot.lane.b32.xlu2 %v327_v36, %s818_s28 }
 0x27a   :  { %525 = vrot.lane.b32.xlu0 %v524_v44, %s822_s30 }
 0x282   :  { %543 = vrot.lane.b32.xlu0 %v524_v44, %s818_s28 }
 0x293   :  { %v295_v45 = vpop.permute.xlu2 %294 }
 0x29b   :  { %v304_v46 = vpop.permute.xlu2 %303 }
 0x2a3   :  { %v332_v51 = vpop.permute.xlu2 %331 }
 0x2ab   :  { %v292_v47 = vpop.permute.xlu1 %291  ;;  %v499_v54 = vpop.permute.xlu2 %498 }
 0x2ac   :  { %v289_v50 = vpop.permute.xlu0 %288 }
 0x2ad   :  { %v310_v2 = vsel %vm309_vm11, %v953_v27, %v289_v50 }
 0x2ae   :  { %v312_v4 = vsel %vm311_vm12, %v310_v2, %v292_v47 }
 0x2af   :  { %v314_v7 = vsel %vm313_vm13, %v312_v4, %v295_v45 }
 0x2b3   :  { %v301_v52 = vpop.permute.xlu1 %300  ;;  %v529_v57 = vpop.permute.xlu2 %528 }
 0x2b4   :  { %v298_v53 = vpop.permute.xlu0 %297 }
 0x2b5   :  { %v316_v9 = vsel %vm315_vm14, %v314_v7, %v298_v53 }
 0x2b6   :  { %v318_v12 = vsel %vm317_vm15, %v316_v9, %v301_v52 }
 0x2b7   :  { %v320_v21 = vsel %vm319_vm1, %v318_v12, %v304_v46 }
 0x2bb   :  { %v329_v55 = vpop.permute.xlu1 %328  ;;  %v532_v61 = vpop.permute.xlu2 %531 }
 0x2bc   :  { %v307_v56 = vpop.permute.xlu0 %306  ;;  %v349_v8 = vsel %vm309_vm11, %v963_v34, %v329_v55 }
 0x2bd   :  { %v350_v10 = vsel %vm311_vm12, %v349_v8, %v332_v51  ;;  %v322_v24 = vsel %vm321_vm3, %v320_v21, %v307_v56 }
 0x2be   :  { %v323_v29 = vperm.slane %v322_v24, 0 }
 0x2c0   :  { %v325_v37 = vmul.f32 %v323_v29, %v915_v20 }
 0x2c3   :  { %v496_v58 = vpop.permute.xlu1 %495  ;;  %v535_v1 = vpop.permute.xlu2 %534 }
 0x2c4   :  { %v335_v59 = vpop.permute.xlu0 %334 }
 0x2c5   :  { %v351_v13 = vsel %vm313_vm13, %v350_v10, %v335_v59 }
 0x2cb   :  { %v502_v60 = vpop.permute.xlu1 %501  ;;  %v538_v6 = vpop.permute.xlu2 %537 }
 0x2cc   :  { %v338_v62 = vpop.permute.xlu0 %337 }
 0x2cd   :  { %v352_v15 = vsel %vm315_vm14, %v351_v13, %v338_v62 }
 0x2d3   :  { %v505_v0 = vpop.permute.xlu1 %504  ;;  %v347_v27 = vpop.permute.xlu2 %346 }
 0x2d4   :  { %v341_v63 = vpop.permute.xlu0 %340 }
 0x2d5   :  { %v353_v17 = vsel %vm317_vm15, %v352_v15, %v341_v63 }
 0x2db   :  { %v508_v5 = vpop.permute.xlu1 %507 }
 0x2dc   :  { %v344_v3 = vpop.permute.xlu0 %343 }
 0x2dd   :  { %v354_v22 = vsel %vm319_vm1, %v353_v17, %v344_v3 }
 0x2de   :  { %v355_v28 = vsel %vm321_vm3, %v354_v22, %v347_v27 }
 0x2df   :  { %v356_v33 = vperm.slane %v355_v28, 0 }
 0x2e1   :  { %v358_v40 = vadd.f32 %v356_v33, %v325_v37 }
 0x2e3   :  { %v511_v25 = vpop.permute.xlu1 %510  ;;  %v360_v47 = vmax.f32 %v358_v40, 0.0 }
 0x2e4   :  { %v493_v11 = vpop.permute.xlu0 %492 }
 0x2e5   :  { %v513_v14 = vsel %vm309_vm11, %v969_v39, %v493_v11  ;;  %v562_v55 = vrot.slane %v360_v47, 6 }
 0x2e6   :  { %v514_v16 = vsel %vm311_vm12, %v513_v14, %v496_v58 }
 0x2e7   :  { %v515_v18 = vsel %vm313_vm13, %v514_v16, %v499_v54 }
 0x2e8   :  { %v516_v23 = vsel %vm315_vm14, %v515_v18, %v502_v60 }
 0x2e9   :  { %v517_v26 = vsel %vm317_vm15, %v516_v23, %v505_v0 }
 0x2ea   :  { %v518_v31 = vsel %vm319_vm1, %v517_v26, %v508_v5 }
 0x2eb   :  { %v519_v36 = vsel %vm321_vm3, %v518_v31, %v511_v25  ;;  %v541_v42 = vpop.permute.xlu1 %540 }
 0x2ec   :  { %v526_v30 = vpop.permute.xlu0 %525  ;;  %v520_v41 = vperm.slane %v519_v36, 0 }
 0x2ed   :  { %v546_v32 = vsel %vm309_vm11, %v976_v43, %v526_v30  ;;  %v324_v43 = vmul.f32 %v323_v29, %v913_v19 }
 0x2ee   :  { %v547_v34 = vsel %vm311_vm12, %v546_v32, %v529_v57  ;;  %v521_v50 = vmul.f32 %v520_v41, %v927_v48  ;;  %v522_v51 = vmul.f32 %v520_v41, %v929_v49 }
 0x2ef   :  { %v548_v35 = vsel %vm313_vm13, %v547_v34, %v532_v61  ;;  %v357_v52 = vadd.f32 %v356_v33, %v324_v43 }
 0x2f0   :  { %v549_v38 = vsel %vm315_vm14, %v548_v35, %v535_v1 }
 0x2f1   :  { %v550_v39 = vsel %vm317_vm15, %v549_v38, %v538_v6  ;;  %v359_v58 = vmax.f32 %v357_v52, 0.0 }
 0x2f2   :  { %v551_v44 = vsel %vm319_vm1, %v550_v39, %v541_v42 }
 0x2f3   :  { %v565_v19 = vsel %vm197_vm2, %v359_v58, %v562_v55 }
 0x2f4   :  { %v544_v45 = vpop.permute.xlu0 %543 }
 0x2f5   :  { %v552_v46 = vsel %vm321_vm3, %v551_v44, %v544_v45 }
 0x2f6   :  { %v553_v20 = vperm.slane %v552_v46, 0 }
 0x2f8   :  { %v554_v53 = vadd.f32 %v553_v20, %v521_v50  ;;  %v555_v54 = vadd.f32 %v553_v20, %v522_v51 }
 0x2fa   :  { %v556_v56 = vmax.f32 %v554_v53, 0.0  ;;  %v557_v57 = vmax.f32 %v555_v54, 0.0 }
 0x2fc   :  { %v563_v59 = vrot.slane %v556_v56, 4  ;;  %v564_v60 = vrot.slane %v557_v57, 2 }
 0x2fe   :  { %v567_v61 = vsel %vm566_vm4, %v563_v59, %v564_v60 }
 0x2ff   :  { %v568_v62 = vsel %vm162_vm0, %v565_v19, %v567_v61 }
 0x300   :  { %570 = vst [vmem:[%s1046_s10] sm:$0xff] %v568_v62 }
 0x301   :  { %575 = vsyncpa [#allocation3], 1 }
 0x302   :  { %576 = vsyncpa [#allocation5], 1 }
 0x303   :  { %577 = vsyncpa [#allocation8], 1 }
 0x304   :  { %578 = vsyncpa [#allocation11], 1 }
 0x305   :  { %579 = vsyncpa [#allocation14], 1 }

// kernel: cdcgan_g_forward.5
= control target key start
LH: loop header
LB: loop body
LE: loop exit
PB: predicated region body
PF: predicated region fallthrough
CT: control target
= control target key end

     0   :  { %10 = vsyncpa [#allocation3], 0  ;;  %s1109_s0 = inlined_call_operand.vmem [shape: bf16[32,512], index: 0, kind: input, shape index: {}]   ;;  %s1110_s1 = inlined_call_operand.vmem [shape: bf16[512,64], index: 1, kind: input, shape index: {}]   ;;  %s1111_s2 = inlined_call_operand.hbm [shape: f32[1,64], index: 2, kind: input, shape index: {}]   ;;  %s1112_s3 = inlined_call_operand.hbm [shape: f32[1,16], index: 3, kind: input, shape index: {}]   ;;  %s1113_s4 = inlined_call_operand.hbm [shape: f32[1,16], index: 4, kind: input, shape index: {}]   ;;  %s1114_s5 = inlined_call_operand.vmem [shape: f32[32,64], index: 5, kind: output, shape index: {}]  }
   0x1   :  { %11 = vsyncpa [#allocation5], 0  ;;  %s32_s20 = sshll.u32 %s1112_s3, 4  ;;  %s869_s21 = smov [#allocation4]   ;;  %s33_s20 = int_to_ptr.hbm [resolvable:$true] %s32_s20 }
   0x2   :  { %s34_s22 = sshll.u32 %s869_s21, 4  ;;  %s21_s25 = sshll.u32 %s1111_s2, 4  ;;  %s35_s22 = int_to_ptr.vmem [resolvable:$true] %s34_s22  ;;  %s22_s25 = int_to_ptr.hbm [resolvable:$true] %s21_s25 }
   0x3   :  { %37 = dma.hbm_to_vmem [thread:$0]  %s33_s20, 16, %s35_s22, [#allocation5]  }
   0x4   :  { %s870_s26 = smov [#allocation2]   ;;  %s43_s30 = sshll.u32 %s1113_s4, 4  ;;  %s44_s30 = int_to_ptr.hbm [resolvable:$true] %s43_s30 }
   0x5   :  { %s23_s27 = sshll.u32 %s870_s26, 4  ;;  %s871_s3 = smov [#allocation6]   ;;  %s24_s27 = int_to_ptr.vmem [resolvable:$true] %s23_s27 }
   0x6   :  { %26 = dma.hbm_to_vmem [thread:$0]  %s22_s25, 16, %s24_s27, [#allocation3]  }
   0x7   :  { %s45_s6 = sshll.u32 %s871_s3, 4  ;;  %s46_s6 = int_to_ptr.vmem [resolvable:$true] %s45_s6 }
   0x8   :  { %48 = dma.hbm_to_vmem [thread:$0]  %s44_s30, 16, %s46_s6, [#allocation5]  }
   0x9   :  { %865 = dma.done.wait [#allocation3], 16  }
   0xa   :  { %866 = vsyncadd [#allocation3], 4294967280 }
   0xb   :  { %867 = dma.done.wait [#allocation5], 32  }
   0xc   :  { %868 = vsyncadd [#allocation5], 4294967264  ;;  %v754_v0 = vld [vmem:[%s1110_s1 + $0x38] sm:$0xff]  ;;  %v753_v4 = vld [vmem:[%s1110_s1 + $0x30] sm:$0xff]  ;;  %vm447_vm0 = vcmask 523264   ;;  %s873_s16 = smov 112  }
   0xd   :  { %v762_v1 = vld [vmem:[%s1110_s1 + $0x78] sm:$0xff]  ;;  %369 = vmatpush.bf16.msra.mxu0 %v754_v0  ;;  %v761_v5 = vld [vmem:[%s1110_s1 + $0x70] sm:$0xff]  ;;  %v752_v8 = vld [vmem:[%s1110_s1 + $0x28] sm:$0xff]  ;;  %s875_s17 = smov 48   ;;  %s876_s18 = smov 16   ;;  %vm535_vm5 = vcmask 130048  }
   0xe   :  { %v770_v2 = vld [vmem:[%s1110_s1 + $0xb8] sm:$0xff]  ;;  %388 = vmatpush.bf16.msra.mxu1 %v762_v1  ;;  %v769_v6 = vld [vmem:[%s1110_s1 + $0xb0] sm:$0xff]  ;;  %v760_v9 = vld [vmem:[%s1110_s1 + $0x68] sm:$0xff]  ;;  %s877_s19 = smov 32   ;;  %vm537_vm6 = vcmask 261120   ;;  %vm539_vm7 = vcmask 392192  }
   0xf   :  { %v778_v3 = vld [vmem:[%s1110_s1 + $0xf8] sm:$0xff]  ;;  %407 = vmatpush.bf16.msra.mxu2 %v770_v2  ;;  %v777_v7 = vld [vmem:[%s1110_s1 + $0xf0] sm:$0xff]  ;;  %v768_v10 = vld [vmem:[%s1110_s1 + $0xa8] sm:$0xff] }
  0x10   :  { %426 = vmatpush.bf16.msra.mxu3 %v778_v3  ;;  %v776_v11 = vld [vmem:[%s1110_s1 + $0xe8] sm:$0xff]  ;;  %v751_v12 = vld [vmem:[%s1110_s1 + $0x20] sm:$0xff]  ;;  %v750_v16 = vld [vmem:[%s1110_s1 + $0x18] sm:$0xff] }
  0x11   :  { %370 = vmatpush.bf16.msra.mxu0 %v753_v4  ;;  %v759_v13 = vld [vmem:[%s1110_s1 + $0x60] sm:$0xff]  ;;  %v758_v17 = vld [vmem:[%s1110_s1 + $0x58] sm:$0xff]  ;;  %v749_v20 = vld [vmem:[%s1110_s1 + $0x10] sm:$0xff] }
  0x12   :  { %389 = vmatpush.bf16.msra.mxu1 %v761_v5  ;;  %v767_v14 = vld [vmem:[%s1110_s1 + $0xa0] sm:$0xff]  ;;  %v766_v18 = vld [vmem:[%s1110_s1 + $0x98] sm:$0xff]  ;;  %v757_v21 = vld [vmem:[%s1110_s1 + $0x50] sm:$0xff] }
  0x13   :  { %408 = vmatpush.bf16.msra.mxu2 %v769_v6  ;;  %v775_v15 = vld [vmem:[%s1110_s1 + $0xe0] sm:$0xff]  ;;  %v774_v19 = vld [vmem:[%s1110_s1 + $0xd8] sm:$0xff]  ;;  %v765_v22 = vld [vmem:[%s1110_s1 + $0x90] sm:$0xff] }
  0x14   :  { %427 = vmatpush.bf16.msra.mxu3 %v777_v7  ;;  %v773_v23 = vld [vmem:[%s1110_s1 + $0xd0] sm:$0xff]  ;;  %v748_v24 = vld [vmem:[%s1110_s1 + $0x8] sm:$0xff]  ;;  %v747_v28 = vld [vmem:[%s1110_s1] sm:$0xff] }
  0x15   :  { %371 = vmatpush.bf16.msra.mxu0 %v752_v8  ;;  %v756_v25 = vld [vmem:[%s1110_s1 + $0x48] sm:$0xff]  ;;  %v755_v29 = vld [vmem:[%s1110_s1 + $0x40] sm:$0xff]  ;;  %v741_v33 = vld [vmem:[%s1109_s0 + $0xc] sm:$0xf0] }
  0x16   :  { %390 = vmatpush.bf16.msra.mxu1 %v760_v9  ;;  %v764_v26 = vld [vmem:[%s1110_s1 + $0x88] sm:$0xff]  ;;  %v763_v30 = vld [vmem:[%s1110_s1 + $0x80] sm:$0xff]  ;;  %v583_v35 = vld [vmem:[%s1109_s0 + $0x10] sm:$0xf0] }
  0x17   :  { %409 = vmatpush.bf16.msra.mxu2 %v768_v10  ;;  %v772_v27 = vld [vmem:[%s1110_s1 + $0xc8] sm:$0xff]  ;;  %v771_v31 = vld [vmem:[%s1110_s1 + $0xc0] sm:$0xff]  ;;  %v742_v37 = vld [vmem:[%s1109_s0 + $0x14] sm:$0xf0] }
  0x18   :  { %428 = vmatpush.bf16.msra.mxu3 %v776_v11  ;;  %v581_v32 = vld [vmem:[%s1109_s0] sm:$0xf]  ;;  %v739_v34 = vld [vmem:[%s1109_s0 + $0x4] sm:$0xf]  ;;  %v589_v36 = vld [vmem:[%s1109_s0 + $0x8] sm:$0xf] }
  0x19   :  { %372 = vmatpush.bf16.msra.mxu0 %v751_v12  ;;  %v740_v38 = vld [vmem:[%s1109_s0 + $0xc] sm:$0xf]  ;;  %v591_v39 = vld [vmem:[%s1109_s0 + $0x18] sm:$0xf0]  ;;  %v582_v40 = vor.u32 %v741_v33, %v581_v32  ;;  %v586_v41 = vor.u32 %v739_v34, %v583_v35  ;;  %v590_v42 = vor.u32 %v742_v37, %v589_v36  ;;  %v597_v44 = vld [vmem:[%s1109_s0 + $0x20] sm:$0xf] }
  0x1a   :  { %391 = vmatpush.bf16.msra.mxu1 %v759_v13  ;;  %v594_v43 = vor.u32 %v740_v38, %v591_v39  ;;  %v745_v45 = vld [vmem:[%s1109_s0 + $0x2c] sm:$0xf0]  ;;  %v743_v46 = vld [vmem:[%s1109_s0 + $0x24] sm:$0xf]  ;;  %v599_v47 = vld [vmem:[%s1109_s0 + $0x30] sm:$0xf0] }
  0x1b   :  { %410 = vmatpush.bf16.msra.mxu2 %v767_v14  ;;  %v605_v48 = vld [vmem:[%s1109_s0 + $0x28] sm:$0xf]  ;;  %v746_v49 = vld [vmem:[%s1109_s0 + $0x34] sm:$0xf0]  ;;  %v744_v50 = vld [vmem:[%s1109_s0 + $0x2c] sm:$0xf]  ;;  %v598_v52 = vor.u32 %v745_v45, %v597_v44  ;;  %v602_v53 = vor.u32 %v743_v46, %v599_v47 }
  0x1c   :  { %429 = vmatpush.bf16.msra.mxu3 %v775_v15  ;;  %v607_v51 = vld [vmem:[%s1109_s0 + $0x38] sm:$0xf0]  ;;  %v606_v54 = vor.u32 %v746_v49, %v605_v48  ;;  %v788_v62 = vld [vmem:[#allocation2] ss:$0 sm:$0xff]  ;;  %s872_s0 = smov 96  }
  0x1d   :  { %373 = vmatpush.bf16.msra.mxu0 %v750_v16  ;;  %v610_v55 = vor.u32 %v744_v50, %v607_v51 }
  0x1e   :  { %392 = vmatpush.bf16.msra.mxu1 %v758_v17 }
  0x1f   :  { %411 = vmatpush.bf16.msra.mxu2 %v766_v18 }
  0x20   :  { %430 = vmatpush.bf16.msra.mxu3 %v774_v19 }
  0x21   :  { %374 = vmatpush.bf16.msra.mxu0 %v749_v20 }
  0x22   :  { %393 = vmatpush.bf16.msra.mxu1 %v757_v21 }
  0x23   :  { %412 = vmatpush.bf16.msra.mxu2 %v765_v22 }
  0x24   :  { %431 = vmatpush.bf16.msra.mxu3 %v773_v23 }
  0x25   :  { %375 = vmatpush.bf16.msra.mxu0 %v748_v24 }
  0x26   :  { %394 = vmatpush.bf16.msra.mxu1 %v756_v25 }
  0x27   :  { %413 = vmatpush.bf16.msra.mxu2 %v764_v26 }
  0x28   :  { %432 = vmatpush.bf16.msra.mxu3 %v772_v27 }
  0x29   :  { %376 = vmatpush.bf16.msra.mxu0 %v747_v28 }
  0x2a   :  { %395 = vmatpush.bf16.msra.mxu1 %v755_v29 }
  0x2b   :  { %414 = vmatpush.bf16.msra.mxu2 %v763_v30 }
  0x2c   :  { %433 = vmatpush.bf16.msra.mxu3 %v771_v31  ;;  %377 = vmatmul.bf16.vlgmr.msra.gmra.mxu0 %v582_v40 }
  0x2d   :  { %396 = vmatmul.bf16.vlgmr.msra.gmra.mxu1 %v586_v41 }
  0x2e   :  { %415 = vmatmul.bf16.vlgmr.msra.gmra.mxu2 %v590_v42 }
  0x2f   :  { %434 = vmatmul.bf16.vlgmr.msra.gmra.mxu3 %v594_v43 }
  0x3c   :  { %382 = vmatmul.bf16.gmra.mxu0 %v598_v52 }
  0x3d   :  { %401 = vmatmul.bf16.gmra.mxu1 %v602_v53 }
  0x3e   :  { %420 = vmatmul.bf16.gmra.mxu2 %v606_v54 }
  0x3f   :  { %439 = vmatmul.bf16.gmra.mxu3 %v610_v55 }
  0xa9   :  { %v378_v56 = vpop.f32.mrf.mxu0 }
  0xaa   :  { %v397_v57 = vpop.f32.mrf.mxu1  ;;  %v379_v63 = vadd.f32 %v788_v62, %v378_v56 }
  0xac   :  { %v398_v5 = vadd.f32 %v397_v57, %v379_v63 }
  0xb1   :  { %v416_v58 = vpop.f32.mrf.mxu2  ;;  %v380_v60 = vpop.f32.mrf.mxu0 }
  0xb2   :  { %v435_v59 = vpop.f32.mrf.mxu3  ;;  %v399_v61 = vpop.f32.mrf.mxu1  ;;  %v381_v0 = vadd.f32 %v788_v62, %v380_v60  ;;  %v417_v10 = vadd.f32 %v416_v58, %v398_v5 }
  0xb4   :  { %v400_v6 = vadd.f32 %v399_v61, %v381_v0  ;;  %v1063_v16 = vadd.f32 %v435_v59, %v417_v10  ;;  %v874_v59 = vmov 128.0  }
  0xb5   :  { %789 = vrcp.f32 %v874_v59 }
  0xb6   :  { %v461_v21 = vmul.f32 %v1063_v16, %v1063_v16  ;;  %v448_v26 = vsel %vm447_vm0, %v1063_v16, 0.0 }
  0xb8   :  { %v465_v32 = vsel %vm447_vm0, %v461_v21, 0.0 }
  0xb9   :  { %v418_v1 = vpop.f32.mrf.mxu2  ;;  %v383_v3 = vpop.f32.mrf.mxu0 }
  0xba   :  { %v437_v2 = vpop.f32.mrf.mxu3  ;;  %v384_v4 = vadd.f32 %v788_v62, %v383_v3  ;;  %v402_v7 = vpop.f32.mrf.mxu1  ;;  %v419_v8 = vadd.f32 %v418_v1, %v400_v6 }
  0xbb   :  { %v790_v60 = vpop.eup %789 }
  0xbc   :  { %v403_v9 = vadd.f32 %v402_v7, %v384_v4  ;;  %v1061_v13 = vadd.f32 %v437_v2, %v419_v8  ;;  %v489_v61 = vmul.f32 128.0, %v790_v60  ;;  %vm493_vm1 = vweird.f32 %v790_v60 }
  0xbe   :  { %v462_v19 = vmul.f32 %v1061_v13, %v1061_v13  ;;  %v449_v22 = vsel %vm447_vm0, %v1061_v13, 0.0 }
  0xbf   :  { %v450_v30 = vadd.f32 %v449_v22, %v448_v26 }
  0xc0   :  { %v466_v27 = vsel %vm447_vm0, %v462_v19, 0.0 }
  0xc1   :  { %v421_v11 = vpop.f32.mrf.mxu2  ;;  %v385_v15 = vpop.f32.mrf.mxu0  ;;  %v467_v35 = vadd.f32 %v466_v27, %v465_v32 }
  0xc2   :  { %v440_v12 = vpop.f32.mrf.mxu3  ;;  %v422_v14 = vadd.f32 %v421_v11, %v403_v9  ;;  %v386_v18 = vadd.f32 %v788_v62, %v385_v15  ;;  %v404_v20 = vpop.f32.mrf.mxu1  ;;  %v490_v62 = vsub.f32 1.0, %v489_v61 }
  0xc4   :  { %v1065_v17 = vadd.f32 %v440_v12, %v422_v14  ;;  %v405_v24 = vadd.f32 %v404_v20, %v386_v18  ;;  %v491_v63 = vmul.f32 %v790_v60, %v490_v62  ;;  %v445_v20 = vld [vmem:[#allocation4] sm:$0x1] }
  0xc6   :  { %v463_v23 = vmul.f32 %v1065_v17, %v1065_v17  ;;  %v451_v28 = vsel %vm447_vm0, %v1065_v17, 0.0  ;;  %v492_v0 = vadd.f32 %v790_v60, %v491_v63 }
  0xc7   :  { %v452_v36 = vadd.f32 %v451_v28, %v450_v30 }
  0xc8   :  { %v468_v33 = vsel %vm447_vm0, %v463_v23, 0.0  ;;  %v494_v3 = vsel %vm493_vm1, %v790_v60, %v492_v0 }
  0xc9   :  { %v423_v25 = vpop.f32.mrf.mxu2  ;;  %v469_v39 = vadd.f32 %v468_v33, %v467_v35 }
  0xca   :  { %v424_v29 = vadd.f32 %v423_v25, %v405_v24  ;;  %v442_v31 = vpop.f32.mrf.mxu3  ;;  %v446_v24 = vld [vmem:[#allocation6] sm:$0x1] }
  0xcc   :  { %v1082_v34 = vadd.f32 %v442_v31, %v424_v29 }
  0xce   :  { %v453_v37 = vsel %vm447_vm0, %v1082_v34, 0.0  ;;  %v464_v38 = vmul.f32 %v1082_v34, %v1082_v34 }
  0xcf   :  { %v454_v40 = vadd.f32 %v453_v37, %v452_v36 }
  0xd0   :  { %v470_v41 = vsel %vm447_vm0, %v464_v38, 0.0 }
  0xd1   :  { %v471_v42 = vadd.f32 %v470_v41, %v469_v39  ;;  %v455_v43 = vrot.slane %v454_v40, 4 }
  0xd3   :  { %v456_v44 = vadd.f32 %v455_v43, %v454_v40  ;;  %v472_v45 = vrot.slane %v471_v42, 4 }
  0xd5   :  { %v457_v46 = vrot.slane %v456_v44, 2  ;;  %v473_v47 = vadd.f32 %v472_v45, %v471_v42 }
  0xd7   :  { %v458_v48 = vadd.f32 %v457_v46, %v456_v44  ;;  %v474_v49 = vrot.slane %v473_v47, 2 }
  0xd9   :  { %v459_v50 = vrot.slane %v458_v48, 1  ;;  %v475_v52 = vadd.f32 %v474_v49, %v473_v47 }
  0xdb   :  { %v460_v51 = vadd.f32 %v459_v50, %v458_v48  ;;  %v476_v53 = vrot.slane %v475_v52, 1 }
  0xdd   :  { %479 = vrot.lane.b32.xlu0 %v460_v51, %s872_s0  ;;  %v477_v54 = vadd.f32 %v476_v53, %v475_v52 }
  0xe5   :  { %497 = vrot.lane.b32.xlu0 %v477_v54, %s872_s0 }
 0x14f   :  { %v480_v55 = vpop.permute.xlu0 %479 }
 0x150   :  { %v482_v56 = vadd.f32 %v480_v55, %v460_v51 }
 0x152   :  { %484 = vrot.lane.b32.xlu1 %v482_v56, %s873_s16 }
 0x157   :  { %v498_v57 = vpop.permute.xlu0 %497 }
 0x158   :  { %v500_v58 = vadd.f32 %v498_v57, %v477_v54 }
 0x15a   :  { %502 = vrot.lane.b32.xlu1 %v500_v58, %s873_s16 }
 0x1c4   :  { %v485_v1 = vpop.permute.xlu1 %484 }
 0x1c5   :  { %v487_v2 = vadd.f32 %v485_v1, %v482_v56 }
 0x1c7   :  { %v495_v4 = vmul.f32 %v494_v3, %v487_v2 }
 0x1c9   :  { %v507_v7 = vmul.f32 %v495_v4, %v495_v4 }
 0x1cc   :  { %v503_v5 = vpop.permute.xlu1 %502 }
 0x1cd   :  { %v505_v6 = vadd.f32 %v503_v5, %v500_v58 }
 0x1cf   :  { %v506_v8 = vmul.f32 %v505_v6, %v494_v3 }
 0x1d1   :  { %v508_v9 = vsub.f32 %v506_v8, %v507_v7 }
 0x1d3   :  { %v509_v10 = vmax.f32 %v508_v9, 0.0 }
 0x1d5   :  { %v510_v11 = vadd.f32 1e-05, %v509_v10 }
 0x1d7   :  { %791 = vrsqrt.f32 %v510_v11  ;;  %vm517_vm3 = vweird.f32 %v510_v11 }
 0x1dd   :  { %v792_v12 = vpop.eup %791 }
 0x1de   :  { %v512_v14 = vmul.f32 %v792_v12, %v510_v11  ;;  %vm518_vm2 = vweird.f32 %v792_v12 }
 0x1df   :  { %vm519_vm4 = vmor %vm517_vm3, %vm518_vm2 }
 0x1e0   :  { %v513_v15 = vmul.f32 %v792_v12, %v512_v14 }
 0x1e2   :  { %v514_v18 = vmul.f32 0.5, %v513_v15 }
 0x1e4   :  { %v515_v19 = vsub.f32 1.5, %v514_v18 }
 0x1e6   :  { %v516_v21 = vmul.f32 %v792_v12, %v515_v19 }
 0x1e8   :  { %v520_v22 = vsel %vm519_vm4, %v792_v12, %v516_v21 }
 0x1e9   :  { %v521_v23 = vmul.f32 %v520_v22, %v445_v20 }
 0x1eb   :  { %v525_v25 = vperm.slane %v521_v23, 0  ;;  %v522_v26 = vmul.f32 %v521_v23, %v495_v4 }
 0x1ed   :  { %532 = vrot.lane.b32.xlu0 %v525_v25, %s875_s17  ;;  %526 = vrot.lane.b32.xlu2 %v525_v25, %s876_s18  ;;  %v523_v27 = vsub.f32 %v446_v24, %v522_v26 }
 0x1ef   :  { %v547_v28 = vperm.slane %v523_v27, 0 }
 0x1f1   :  { %548 = vrot.lane.b32.xlu1 %v547_v28, %s876_s18 }
 0x1f5   :  { %529 = vrot.lane.b32.xlu2 %v525_v25, %s877_s19  ;;  %554 = vrot.lane.b32.xlu0 %v547_v28, %s875_s17 }
 0x1fd   :  { %551 = vrot.lane.b32.xlu2 %v547_v28, %s877_s19 }
 0x247   :  { %v527_v29 = vpop.permute.xlu2 %526 }
 0x248   :  { %v536_v31 = vsel %vm535_vm5, %v521_v23, %v527_v29 }
 0x24f   :  { %v530_v30 = vpop.permute.xlu2 %529 }
 0x250   :  { %v538_v33 = vsel %vm537_vm6, %v536_v31, %v530_v30 }
 0x257   :  { %v552_v39 = vpop.permute.xlu2 %551 }
 0x25f   :  { %v533_v32 = vpop.permute.xlu0 %532 }
 0x260   :  { %v540_v35 = vsel %vm539_vm7, %v538_v33, %v533_v32 }
 0x261   :  { %v541_v37 = vperm.slane %v540_v35, 0 }
 0x263   :  { %v549_v36 = vpop.permute.xlu1 %548  ;;  %v542_v42 = vmul.f32 %v541_v37, %v1063_v16  ;;  %v543_v44 = vmul.f32 %v541_v37, %v1061_v13  ;;  %v544_v45 = vmul.f32 %v541_v37, %v1065_v17  ;;  %v545_v46 = vmul.f32 %v541_v37, %v1082_v34 }
 0x264   :  { %v557_v38 = vsel %vm535_vm5, %v523_v27, %v549_v36 }
 0x265   :  { %v558_v41 = vsel %vm537_vm6, %v557_v38, %v552_v39 }
 0x267   :  { %v555_v40 = vpop.permute.xlu0 %554 }
 0x268   :  { %v559_v43 = vsel %vm539_vm7, %v558_v41, %v555_v40 }
 0x269   :  { %v560_v47 = vperm.slane %v559_v43, 0 }
 0x26b   :  { %v561_v48 = vadd.f32 %v560_v47, %v542_v42  ;;  %v562_v49 = vadd.f32 %v560_v47, %v543_v44  ;;  %v563_v50 = vadd.f32 %v560_v47, %v544_v45  ;;  %v564_v51 = vadd.f32 %v560_v47, %v545_v46 }
 0x26d   :  { %v565_v52 = vmax.f32 %v561_v48, 0.0  ;;  %v566_v53 = vmax.f32 %v562_v49, 0.0  ;;  %v567_v54 = vmax.f32 %v563_v50, 0.0  ;;  %v568_v55 = vmax.f32 %v564_v51, 0.0 }
 0x26f   :  { %569 = vst.msk [vmem:[%s1114_s5] sm:$0xff] %vm447_vm0, %v565_v52 }
 0x270   :  { %570 = vst.msk [vmem:[%s1114_s5 + $0x8] sm:$0xff] %vm447_vm0, %v566_v53 }
 0x271   :  { %571 = vst.msk [vmem:[%s1114_s5 + $0x10] sm:$0xff] %vm447_vm0, %v567_v54 }
 0x272   :  { %572 = vst.msk [vmem:[%s1114_s5 + $0x18] sm:$0xff] %vm447_vm0, %v568_v55 }
 0x273   :  { %577 = vsyncpa [#allocation3], 1 }
 0x274   :  { %578 = vsyncpa [#allocation5], 1 }

// kernel: cdcgan_g_forward.6
= control target key start
LH: loop header
LB: loop body
LE: loop exit
PB: predicated region body
PF: predicated region fallthrough
CT: control target
= control target key end

     0   :  { %vm348_vm0 = vcmask 261120   ;;  %s774_s12 = smov 120   ;;  %s776_s17 = smov 24   ;;  %vm496_vm5 = vcmask 64512   ;;  %vm498_vm6 = vcmask 130048   ;;  %vm500_vm7 = vcmask 195584   ;;  %s1196_s1 = inlined_call_operand.vmem [shape: bf16[256,32], index: 1, kind: input, shape index: {}]   ;;  %s1197_s2 = inlined_call_operand.vmem [shape: f32[1,32], index: 2, kind: input, shape index: {}]   ;;  %s1198_s0 = inlined_call_operand.vmem [shape: bf16[128,256], index: 0, kind: input, shape index: {}]   ;;  %s1199_s3 = inlined_call_operand.vmem [shape: f32[1,8], index: 3, kind: input, shape index: {}]   ;;  %s1200_s4 = inlined_call_operand.vmem [shape: f32[1,8], index: 4, kind: input, shape index: {}]   ;;  %s1201_s5 = inlined_call_operand.vmem [shape: f32[128,32], index: 5, kind: output, shape index: {}]  }
   0x1   :  { %v737_v0 = vld [vmem:[%s1196_s1 + $0x38] sm:$0xff]  ;;  %v736_v2 = vld [vmem:[%s1196_s1 + $0x30] sm:$0xff]  ;;  %v735_v4 = vld [vmem:[%s1196_s1 + $0x28] sm:$0xff]  ;;  %s777_s18 = smov 8   ;;  %s778_s19 = smov 16  }
   0x2   :  { %v745_v1 = vld [vmem:[%s1196_s1 + $0x78] sm:$0xff]  ;;  %248 = vmatpush.bf16.msra.mxu0 %v737_v0  ;;  %v744_v3 = vld [vmem:[%s1196_s1 + $0x70] sm:$0xff]  ;;  %746 = vmatpush.bf16.msra.mxu2 %v737_v0  ;;  %v743_v5 = vld [vmem:[%s1196_s1 + $0x68] sm:$0xff] }
   0x3   :  { %297 = vmatpush.bf16.msra.mxu1 %v745_v1  ;;  %754 = vmatpush.bf16.msra.mxu3 %v745_v1  ;;  %v734_v6 = vld [vmem:[%s1196_s1 + $0x20] sm:$0xff]  ;;  %v733_v8 = vld [vmem:[%s1196_s1 + $0x18] sm:$0xff]  ;;  %v732_v10 = vld [vmem:[%s1196_s1 + $0x10] sm:$0xff] }
   0x4   :  { %v742_v7 = vld [vmem:[%s1196_s1 + $0x60] sm:$0xff]  ;;  %v741_v9 = vld [vmem:[%s1196_s1 + $0x58] sm:$0xff]  ;;  %v740_v11 = vld [vmem:[%s1196_s1 + $0x50] sm:$0xff] }
   0x5   :  { %v731_v12 = vld [vmem:[%s1196_s1 + $0x8] sm:$0xff]  ;;  %v730_v14 = vld [vmem:[%s1196_s1] sm:$0xff]  ;;  %v596_v28 = vld [vmem:[%s1198_s0 + $0x10] sm:$0xf] }
   0x6   :  { %249 = vmatpush.bf16.msra.mxu0 %v736_v2  ;;  %747 = vmatpush.bf16.msra.mxu2 %v736_v2  ;;  %v739_v13 = vld [vmem:[%s1196_s1 + $0x48] sm:$0xff]  ;;  %v738_v15 = vld [vmem:[%s1196_s1 + $0x40] sm:$0xff]  ;;  %v717_v29 = vld [vmem:[%s1198_s0 + $0x14] sm:$0xf0] }
   0x7   :  { %298 = vmatpush.bf16.msra.mxu1 %v744_v3  ;;  %755 = vmatpush.bf16.msra.mxu3 %v744_v3  ;;  %v588_v16 = vld [vmem:[%s1198_s0] sm:$0xf]  ;;  %v715_v17 = vld [vmem:[%s1198_s0 + $0x4] sm:$0xf0]  ;;  %v714_v18 = vld [vmem:[%s1198_s0 + $0x4] sm:$0xf]  ;;  %v597_v36 = vor.u32 %v717_v29, %v596_v28 }
   0x8   :  { %v590_v19 = vld [vmem:[%s1198_s0 + $0x8] sm:$0xf0]  ;;  %v620_v20 = vld [vmem:[%s1198_s0 + $0x40] sm:$0xf]  ;;  %v723_v21 = vld [vmem:[%s1198_s0 + $0x44] sm:$0xf0]  ;;  %v589_v24 = vor.u32 %v715_v17, %v588_v16 }
   0x9   :  { %v722_v22 = vld [vmem:[%s1198_s0 + $0x44] sm:$0xf]  ;;  %v622_v23 = vld [vmem:[%s1198_s0 + $0x48] sm:$0xf0]  ;;  %v593_v25 = vor.u32 %v714_v18, %v590_v19  ;;  %v621_v26 = vor.u32 %v723_v21, %v620_v20  ;;  %v716_v30 = vld [vmem:[%s1198_s0 + $0x14] sm:$0xf] }
   0xa   :  { %250 = vmatpush.bf16.msra.mxu0 %v735_v4  ;;  %748 = vmatpush.bf16.msra.mxu2 %v735_v4  ;;  %v625_v27 = vor.u32 %v722_v22, %v622_v23  ;;  %v598_v31 = vld [vmem:[%s1198_s0 + $0x18] sm:$0xf0]  ;;  %v628_v32 = vld [vmem:[%s1198_s0 + $0x50] sm:$0xf]  ;;  %v725_v33 = vld [vmem:[%s1198_s0 + $0x54] sm:$0xf0] }
   0xb   :  { %299 = vmatpush.bf16.msra.mxu1 %v743_v5  ;;  %756 = vmatpush.bf16.msra.mxu3 %v743_v5  ;;  %v724_v34 = vld [vmem:[%s1198_s0 + $0x54] sm:$0xf]  ;;  %v630_v35 = vld [vmem:[%s1198_s0 + $0x58] sm:$0xf0]  ;;  %v601_v37 = vor.u32 %v716_v30, %v598_v31  ;;  %v629_v38 = vor.u32 %v725_v33, %v628_v32  ;;  %v604_v40 = vld [vmem:[%s1198_s0 + $0x20] sm:$0xf] }
   0xc   :  { %v633_v39 = vor.u32 %v724_v34, %v630_v35  ;;  %v719_v41 = vld [vmem:[%s1198_s0 + $0x24] sm:$0xf0]  ;;  %v718_v42 = vld [vmem:[%s1198_s0 + $0x24] sm:$0xf]  ;;  %v606_v43 = vld [vmem:[%s1198_s0 + $0x28] sm:$0xf0] }
   0xd   :  { %v636_v44 = vld [vmem:[%s1198_s0 + $0x60] sm:$0xf]  ;;  %v727_v45 = vld [vmem:[%s1198_s0 + $0x64] sm:$0xf0]  ;;  %v726_v46 = vld [vmem:[%s1198_s0 + $0x64] sm:$0xf]  ;;  %v605_v48 = vor.u32 %v719_v41, %v604_v40  ;;  %v609_v49 = vor.u32 %v718_v42, %v606_v43 }
   0xe   :  { %251 = vmatpush.bf16.msra.mxu0 %v734_v6  ;;  %749 = vmatpush.bf16.msra.mxu2 %v734_v6  ;;  %v638_v47 = vld [vmem:[%s1198_s0 + $0x68] sm:$0xf0]  ;;  %v637_v50 = vor.u32 %v727_v45, %v636_v44  ;;  %v612_v52 = vld [vmem:[%s1198_s0 + $0x30] sm:$0xf]  ;;  %v721_v53 = vld [vmem:[%s1198_s0 + $0x34] sm:$0xf0] }
   0xf   :  { %300 = vmatpush.bf16.msra.mxu1 %v742_v7  ;;  %757 = vmatpush.bf16.msra.mxu3 %v742_v7  ;;  %v641_v51 = vor.u32 %v726_v46, %v638_v47  ;;  %v720_v54 = vld [vmem:[%s1198_s0 + $0x34] sm:$0xf]  ;;  %v614_v55 = vld [vmem:[%s1198_s0 + $0x38] sm:$0xf0]  ;;  %v644_v56 = vld [vmem:[%s1198_s0 + $0x70] sm:$0xf]  ;;  %v613_v60 = vor.u32 %v721_v53, %v612_v52 }
  0x10   :  { %v729_v57 = vld [vmem:[%s1198_s0 + $0x74] sm:$0xf0]  ;;  %v728_v58 = vld [vmem:[%s1198_s0 + $0x74] sm:$0xf]  ;;  %v646_v59 = vld [vmem:[%s1198_s0 + $0x78] sm:$0xf0]  ;;  %v617_v61 = vor.u32 %v720_v54, %v614_v55 }
  0x11   :  { %v645_v62 = vor.u32 %v729_v57, %v644_v56  ;;  %v649_v63 = vor.u32 %v728_v58, %v646_v59  ;;  %v966_v18 = vld [vmem:[%s1197_s2] ss:$0 sm:$0xff]  ;;  %s773_s2 = smov 112  }
  0x12   :  { %252 = vmatpush.bf16.msra.mxu0 %v733_v8  ;;  %750 = vmatpush.bf16.msra.mxu2 %v733_v8 }
  0x13   :  { %301 = vmatpush.bf16.msra.mxu1 %v741_v9  ;;  %758 = vmatpush.bf16.msra.mxu3 %v741_v9 }
  0x16   :  { %253 = vmatpush.bf16.msra.mxu0 %v732_v10  ;;  %751 = vmatpush.bf16.msra.mxu2 %v732_v10 }
  0x17   :  { %302 = vmatpush.bf16.msra.mxu1 %v740_v11  ;;  %759 = vmatpush.bf16.msra.mxu3 %v740_v11 }
  0x1a   :  { %254 = vmatpush.bf16.msra.mxu0 %v731_v12  ;;  %752 = vmatpush.bf16.msra.mxu2 %v731_v12 }
  0x1b   :  { %303 = vmatpush.bf16.msra.mxu1 %v739_v13  ;;  %760 = vmatpush.bf16.msra.mxu3 %v739_v13 }
  0x1e   :  { %255 = vmatpush.bf16.msra.mxu0 %v730_v14  ;;  %753 = vmatpush.bf16.msra.mxu2 %v730_v14 }
  0x1f   :  { %304 = vmatpush.bf16.msra.mxu1 %v738_v15  ;;  %761 = vmatpush.bf16.msra.mxu3 %v738_v15 }
  0x21   :  { %256 = vmatmul.bf16.vlgmr.msra.gmra.mxu0 %v589_v24  ;;  %276 = vmatmul.bf16.vlgmr.msra.gmra.mxu2 %v621_v26 }
  0x22   :  { %305 = vmatmul.bf16.vlgmr.msra.gmra.mxu1 %v593_v25  ;;  %325 = vmatmul.bf16.vlgmr.msra.gmra.mxu3 %v625_v27 }
  0x31   :  { %261 = vmatmul.bf16.gmra.mxu0 %v597_v36  ;;  %281 = vmatmul.bf16.gmra.mxu2 %v629_v38 }
  0x32   :  { %310 = vmatmul.bf16.gmra.mxu1 %v601_v37  ;;  %330 = vmatmul.bf16.gmra.mxu3 %v633_v39 }
  0x41   :  { %266 = vmatmul.bf16.gmra.mxu0 %v605_v48  ;;  %286 = vmatmul.bf16.gmra.mxu2 %v637_v50 }
  0x42   :  { %315 = vmatmul.bf16.gmra.mxu1 %v609_v49  ;;  %335 = vmatmul.bf16.gmra.mxu3 %v641_v51 }
  0x51   :  { %271 = vmatmul.bf16.gmra.mxu0 %v613_v60  ;;  %291 = vmatmul.bf16.gmra.mxu2 %v645_v62 }
  0x52   :  { %320 = vmatmul.bf16.gmra.mxu1 %v617_v61  ;;  %340 = vmatmul.bf16.gmra.mxu3 %v649_v63 }
  0x9e   :  { %v257_v0 = vpop.f32.mrf.mxu0 }
  0x9f   :  { %v306_v1 = vpop.f32.mrf.mxu1  ;;  %v258_v20 = vadd.f32 %v966_v18, %v257_v0 }
  0xa1   :  { %v978_v28 = vadd.f32 %v306_v1, %v258_v20 }
  0xa3   :  { %v386_v34 = vmul.f32 %v978_v28, %v978_v28  ;;  %v349_v40 = vsel %vm348_vm0, %v978_v28, 0.0 }
  0xa4   :  { %v277_v2 = vpop.f32.mrf.mxu2 }
  0xa5   :  { %v953_v3 = vpop.f32.mrf.mxu3  ;;  %v402_v48 = vsel %vm348_vm0, %v386_v34, 0.0  ;;  %v278_v54 = vadd.f32 %v966_v18, %v277_v2 }
  0xa6   :  { %v259_v4 = vpop.f32.mrf.mxu0 }
  0xa7   :  { %v308_v5 = vpop.f32.mrf.mxu1  ;;  %v260_v19 = vadd.f32 %v966_v18, %v259_v4  ;;  %v1029_v4 = vadd.f32 %v953_v3, %v278_v54 }
  0xa9   :  { %v975_v24 = vadd.f32 %v308_v5, %v260_v19 }
  0xab   :  { %v387_v31 = vmul.f32 %v975_v24, %v975_v24  ;;  %v350_v35 = vsel %vm348_vm0, %v975_v24, 0.0 }
  0xac   :  { %v279_v6 = vpop.f32.mrf.mxu2  ;;  %v351_v49 = vadd.f32 %v350_v35, %v349_v40 }
  0xad   :  { %v955_v7 = vpop.f32.mrf.mxu3  ;;  %v403_v41 = vsel %vm348_vm0, %v387_v31, 0.0  ;;  %v280_v60 = vadd.f32 %v966_v18, %v279_v6 }
  0xae   :  { %v262_v8 = vpop.f32.mrf.mxu0  ;;  %v404_v55 = vadd.f32 %v403_v41, %v402_v48  ;;  %v364_v41 = vsel %vm348_vm0, %v1029_v4, 0.0 }
  0xaf   :  { %v311_v9 = vpop.f32.mrf.mxu1  ;;  %v263_v21 = vadd.f32 %v966_v18, %v262_v8 }
  0xb1   :  { %v980_v29 = vadd.f32 %v311_v9, %v263_v21 }
  0xb3   :  { %v388_v36 = vmul.f32 %v980_v29, %v980_v29  ;;  %v352_v44 = vsel %vm348_vm0, %v980_v29, 0.0 }
  0xb4   :  { %v282_v10 = vpop.f32.mrf.mxu2  ;;  %v353_v56 = vadd.f32 %v352_v44, %v351_v49 }
  0xb5   :  { %v957_v11 = vpop.f32.mrf.mxu3  ;;  %v405_v50 = vsel %vm348_vm0, %v388_v36, 0.0 }
  0xb6   :  { %v264_v12 = vpop.f32.mrf.mxu0  ;;  %v406_v61 = vadd.f32 %v405_v50, %v404_v55 }
  0xb7   :  { %v313_v13 = vpop.f32.mrf.mxu1  ;;  %v265_v27 = vadd.f32 %v966_v18, %v264_v12  ;;  %v283_v12 = vadd.f32 %v966_v18, %v282_v10 }
  0xb9   :  { %v985_v32 = vadd.f32 %v313_v13, %v265_v27  ;;  %v394_v27 = vmul.f32 %v1029_v4, %v1029_v4 }
  0xbb   :  { %v389_v45 = vmul.f32 %v985_v32, %v985_v32  ;;  %v354_v51 = vsel %vm348_vm0, %v985_v32, 0.0 }
  0xbc   :  { %v959_v14 = vpop.f32.mrf.mxu2  ;;  %v355_v62 = vadd.f32 %v354_v51, %v353_v56 }
  0xbd   :  { %v961_v15 = vpop.f32.mrf.mxu3  ;;  %v407_v57 = vsel %vm348_vm0, %v389_v45, 0.0 }
  0xbe   :  { %v267_v16 = vpop.f32.mrf.mxu0  ;;  %v408_v5 = vadd.f32 %v407_v57, %v406_v61 }
  0xbf   :  { %v316_v17 = vpop.f32.mrf.mxu1  ;;  %v268_v30 = vadd.f32 %v966_v18, %v267_v16 }
  0xc1   :  { %v994_v37 = vadd.f32 %v316_v17, %v268_v30  ;;  %v1037_v17 = vadd.f32 %v955_v7, %v280_v60 }
  0xc3   :  { %v390_v52 = vmul.f32 %v994_v37, %v994_v37  ;;  %v356_v58 = vsel %vm348_vm0, %v994_v37, 0.0  ;;  %v395_v35 = vmul.f32 %v1037_v17, %v1037_v17  ;;  %v366_v48 = vsel %vm348_vm0, %v1037_v17, 0.0 }
  0xc4   :  { %v971_v22 = vpop.f32.mrf.mxu2  ;;  %v357_v8 = vadd.f32 %v356_v58, %v355_v62 }
  0xc5   :  { %v973_v23 = vpop.f32.mrf.mxu3  ;;  %v409_v63 = vsel %vm348_vm0, %v390_v52, 0.0  ;;  %v288_v7 = vadd.f32 %v966_v18, %v971_v22 }
  0xc6   :  { %v269_v25 = vpop.f32.mrf.mxu0  ;;  %v410_v19 = vadd.f32 %v409_v63, %v408_v5 }
  0xc7   :  { %v318_v26 = vpop.f32.mrf.mxu1  ;;  %v270_v33 = vadd.f32 %v966_v18, %v269_v25  ;;  %v285_v25 = vadd.f32 %v966_v18, %v959_v14  ;;  %v1070_v50 = vadd.f32 %v973_v23, %v288_v7 }
  0xc9   :  { %v1005_v46 = vadd.f32 %v318_v26, %v270_v33  ;;  %v1047_v33 = vadd.f32 %v957_v11, %v283_v12  ;;  %v1060_v11 = vadd.f32 %v961_v15, %v285_v25  ;;  %v398_v62 = vmul.f32 %v1070_v50, %v1070_v50 }
  0xcb   :  { %v391_v59 = vmul.f32 %v1005_v46, %v1005_v46  ;;  %v358_v0 = vsel %vm348_vm0, %v1005_v46, 0.0  ;;  %v396_v49 = vmul.f32 %v1047_v33, %v1047_v33  ;;  %v368_v54 = vsel %vm348_vm0, %v1047_v33, 0.0 }
  0xcc   :  { %v289_v38 = vpop.f32.mrf.mxu2  ;;  %v359_v20 = vadd.f32 %v358_v0, %v357_v8  ;;  %v397_v55 = vmul.f32 %v1060_v11, %v1060_v11  ;;  %v370_v61 = vsel %vm348_vm0, %v1060_v11, 0.0  ;;  %v425_v12 = vsel %vm348_vm0, %v398_v62, 0.0 }
  0xcd   :  { %v996_v39 = vpop.f32.mrf.mxu3  ;;  %v411_v6 = vsel %vm348_vm0, %v391_v59, 0.0  ;;  %v421_v60 = vsel %vm348_vm0, %v396_v49, 0.0 }
  0xce   :  { %v272_v42 = vpop.f32.mrf.mxu0  ;;  %v412_v30 = vadd.f32 %v411_v6, %v410_v19 }
  0xcf   :  { %v321_v43 = vpop.f32.mrf.mxu1  ;;  %v273_v47 = vadd.f32 %v966_v18, %v272_v42  ;;  %v290_v42 = vadd.f32 %v966_v18, %v289_v38  ;;  %v419_v38 = vsel %vm348_vm0, %v395_v35, 0.0 }
  0xd1   :  { %v1014_v53 = vadd.f32 %v321_v43, %v273_v47  ;;  %v417_v43 = vsel %vm348_vm0, %v394_v27, 0.0  ;;  %v1079_v56 = vadd.f32 %v996_v39, %v290_v42  ;;  %v423_v39 = vsel %vm348_vm0, %v397_v55, 0.0 }
  0xd3   :  { %v392_v1 = vmul.f32 %v1014_v53, %v1014_v53  ;;  %v360_v13 = vsel %vm348_vm0, %v1014_v53, 0.0  ;;  %v374_v6 = vsel %vm348_vm0, %v1079_v56, 0.0 }
  0xd4   :  { %v292_v2 = vpop.f32.mrf.mxu2  ;;  %v361_v31 = vadd.f32 %v360_v13, %v359_v20 }
  0xd5   :  { %v341_v3 = vpop.f32.mrf.mxu3  ;;  %v413_v26 = vsel %vm348_vm0, %v392_v1, 0.0  ;;  %v293_v15 = vadd.f32 %v966_v18, %v292_v2  ;;  %v399_v2 = vmul.f32 %v1079_v56, %v1079_v56 }
  0xd6   :  { %v274_v9 = vpop.f32.mrf.mxu0  ;;  %v414_v36 = vadd.f32 %v413_v26, %v412_v30 }
  0xd7   :  { %v275_v16 = vadd.f32 %v966_v18, %v274_v9  ;;  %v323_v21 = vpop.f32.mrf.mxu1  ;;  %v1087_v63 = vadd.f32 %v341_v3, %v293_v15  ;;  %v427_v20 = vsel %vm348_vm0, %v399_v2, 0.0 }
  0xd9   :  { %v1042_v10 = vadd.f32 %v323_v21, %v275_v16  ;;  %v400_v13 = vmul.f32 %v1087_v63, %v1087_v63  ;;  %v376_v21 = vsel %vm348_vm0, %v1087_v63, 0.0 }
  0xdb   :  { %v362_v34 = vsel %vm348_vm0, %v1042_v10, 0.0  ;;  %v393_v14 = vmul.f32 %v1042_v10, %v1042_v10  ;;  %v429_v27 = vsel %vm348_vm0, %v400_v13, 0.0 }
  0xdc   :  { %v363_v40 = vadd.f32 %v362_v34, %v361_v31  ;;  %v294_v47 = vpop.f32.mrf.mxu2 }
  0xdd   :  { %v415_v22 = vsel %vm348_vm0, %v393_v14, 0.0  ;;  %v295_v57 = vadd.f32 %v966_v18, %v294_v47  ;;  %v343_v59 = vpop.f32.mrf.mxu3  ;;  %v372_v18 = vsel %vm348_vm0, %v1070_v50, 0.0 }
  0xde   :  { %v365_v44 = vadd.f32 %v364_v41, %v363_v40  ;;  %v416_v45 = vadd.f32 %v415_v22, %v414_v36 }
  0xdf   :  { %v1094_v5 = vadd.f32 %v343_v59, %v295_v57 }
  0xe0   :  { %v367_v51 = vadd.f32 %v366_v48, %v365_v44  ;;  %v418_v52 = vadd.f32 %v417_v43, %v416_v45 }
  0xe1   :  { %v401_v3 = vmul.f32 %v1094_v5, %v1094_v5  ;;  %v378_v30 = vsel %vm348_vm0, %v1094_v5, 0.0 }
  0xe2   :  { %v369_v58 = vadd.f32 %v368_v54, %v367_v51  ;;  %v420_v23 = vadd.f32 %v419_v38, %v418_v52  ;;  %v775_v54 = vmov 512.0  }
  0xe3   :  { %v431_v34 = vsel %vm348_vm0, %v401_v3, 0.0  ;;  %769 = vrcp.f32 %v775_v54 }
  0xe4   :  { %v422_v0 = vadd.f32 %v421_v60, %v420_v23  ;;  %v371_v1 = vadd.f32 %v370_v61, %v369_v58 }
  0xe6   :  { %v373_v8 = vadd.f32 %v372_v18, %v371_v1  ;;  %v424_v9 = vadd.f32 %v423_v39, %v422_v0 }
  0xe8   :  { %v375_v16 = vadd.f32 %v374_v6, %v373_v8  ;;  %v426_v19 = vadd.f32 %v425_v12, %v424_v9 }
  0xe9   :  { %v770_v55 = vpop.eup %769 }
  0xea   :  { %v377_v25 = vadd.f32 %v376_v21, %v375_v16  ;;  %v428_v26 = vadd.f32 %v427_v20, %v426_v19  ;;  %v450_v57 = vmul.f32 512.0, %v770_v55  ;;  %vm454_vm1 = vweird.f32 %v770_v55  ;;  %v346_v21 = vld [vmem:[%s1199_s3] sm:$0x1] }
  0xec   :  { %v430_v31 = vadd.f32 %v429_v27, %v428_v26  ;;  %v379_v7 = vadd.f32 %v378_v30, %v377_v25  ;;  %v451_v58 = vsub.f32 1.0, %v450_v57  ;;  %v347_v27 = vld [vmem:[%s1200_s4] sm:$0x1] }
  0xee   :  { %v432_v14 = vadd.f32 %v431_v34, %v430_v31  ;;  %v380_v35 = vrot.slane %v379_v7, 4  ;;  %v452_v23 = vmul.f32 %v770_v55, %v451_v58 }
  0xf0   :  { %v381_v36 = vadd.f32 %v380_v35, %v379_v7  ;;  %v433_v40 = vrot.slane %v432_v14, 4  ;;  %v453_v59 = vadd.f32 %v770_v55, %v452_v23 }
  0xf2   :  { %v382_v41 = vrot.slane %v381_v36, 2  ;;  %v434_v42 = vadd.f32 %v433_v40, %v432_v14  ;;  %v455_v62 = vsel %vm454_vm1, %v770_v55, %v453_v59 }
  0xf4   :  { %v383_v22 = vadd.f32 %v382_v41, %v381_v36  ;;  %v435_v43 = vrot.slane %v434_v42, 2 }
  0xf6   :  { %v384_v44 = vrot.slane %v383_v22, 1  ;;  %v436_v47 = vadd.f32 %v435_v43, %v434_v42 }
  0xf8   :  { %v385_v45 = vadd.f32 %v384_v44, %v383_v22  ;;  %v437_v48 = vrot.slane %v436_v47, 1 }
  0xfa   :  { %440 = vrot.lane.b32.xlu0 %v385_v45, %s773_s2  ;;  %v438_v49 = vadd.f32 %v437_v48, %v436_v47 }
 0x102   :  { %458 = vrot.lane.b32.xlu0 %v438_v49, %s773_s2 }
 0x16c   :  { %v441_v15 = vpop.permute.xlu0 %440 }
 0x16d   :  { %v443_v38 = vadd.f32 %v441_v15, %v385_v45 }
 0x16f   :  { %445 = vrot.lane.b32.xlu1 %v443_v38, %s774_s12 }
 0x174   :  { %v459_v51 = vpop.permute.xlu0 %458 }
 0x175   :  { %v461_v52 = vadd.f32 %v459_v51, %v438_v49 }
 0x177   :  { %463 = vrot.lane.b32.xlu1 %v461_v52, %s774_s12 }
 0x1e1   :  { %v446_v60 = vpop.permute.xlu1 %445 }
 0x1e2   :  { %v448_v61 = vadd.f32 %v446_v60, %v443_v38 }
 0x1e4   :  { %v456_v0 = vmul.f32 %v455_v62, %v448_v61 }
 0x1e6   :  { %v468_v18 = vmul.f32 %v456_v0, %v456_v0 }
 0x1e9   :  { %v464_v1 = vpop.permute.xlu1 %463 }
 0x1ea   :  { %v466_v39 = vadd.f32 %v464_v1, %v461_v52 }
 0x1ec   :  { %v467_v2 = vmul.f32 %v466_v39, %v455_v62 }
 0x1ee   :  { %v469_v8 = vsub.f32 %v467_v2, %v468_v18 }
 0x1f0   :  { %v470_v9 = vmax.f32 %v469_v8, 0.0 }
 0x1f2   :  { %v471_v12 = vadd.f32 1e-05, %v470_v9 }
 0x1f4   :  { %771 = vrsqrt.f32 %v471_v12  ;;  %vm478_vm3 = vweird.f32 %v471_v12 }
 0x1fa   :  { %v772_v6 = vpop.eup %771 }
 0x1fb   :  { %v473_v13 = vmul.f32 %v772_v6, %v471_v12  ;;  %vm479_vm2 = vweird.f32 %v772_v6 }
 0x1fc   :  { %vm480_vm4 = vmor %vm478_vm3, %vm479_vm2 }
 0x1fd   :  { %v474_v16 = vmul.f32 %v772_v6, %v473_v13 }
 0x1ff   :  { %v475_v19 = vmul.f32 0.5, %v474_v16 }
 0x201   :  { %v476_v20 = vsub.f32 1.5, %v475_v19 }
 0x203   :  { %v477_v3 = vmul.f32 %v772_v6, %v476_v20 }
 0x205   :  { %v481_v25 = vsel %vm480_vm4, %v772_v6, %v477_v3 }
 0x206   :  { %v482_v26 = vmul.f32 %v481_v25, %v346_v21 }
 0x208   :  { %v486_v30 = vperm.slane %v482_v26, 0  ;;  %v483_v31 = vmul.f32 %v482_v26, %v456_v0 }
 0x20a   :  { %493 = vrot.lane.b32.xlu0 %v486_v30, %s776_s17  ;;  %487 = vrot.lane.b32.xlu2 %v486_v30, %s777_s18  ;;  %v484_v7 = vsub.f32 %v347_v27, %v483_v31 }
 0x20c   :  { %v520_v34 = vperm.slane %v484_v7, 0 }
 0x20e   :  { %521 = vrot.lane.b32.xlu1 %v520_v34, %s777_s18 }
 0x212   :  { %490 = vrot.lane.b32.xlu2 %v486_v30, %s778_s19  ;;  %527 = vrot.lane.b32.xlu0 %v520_v34, %s776_s17 }
 0x21a   :  { %524 = vrot.lane.b32.xlu2 %v520_v34, %s778_s19 }
 0x264   :  { %v488_v14 = vpop.permute.xlu2 %487 }
 0x265   :  { %v497_v40 = vsel %vm496_vm5, %v482_v26, %v488_v14 }
 0x26c   :  { %v491_v35 = vpop.permute.xlu2 %490 }
 0x26d   :  { %v499_v41 = vsel %vm498_vm6, %v497_v40, %v491_v35 }
 0x274   :  { %v525_v44 = vpop.permute.xlu2 %524 }
 0x27c   :  { %v494_v36 = vpop.permute.xlu0 %493 }
 0x27d   :  { %v501_v42 = vsel %vm500_vm7, %v499_v41, %v494_v36 }
 0x27e   :  { %v502_v43 = vperm.slane %v501_v42, 0 }
 0x280   :  { %v522_v22 = vpop.permute.xlu1 %521  ;;  %v503_v15 = vmul.f32 %v502_v43, %v978_v28  ;;  %v504_v38 = vmul.f32 %v502_v43, %v975_v24  ;;  %v505_v51 = vmul.f32 %v502_v43, %v980_v29  ;;  %v506_v54 = vmul.f32 %v502_v43, %v985_v32 }
 0x281   :  { %v530_v45 = vsel %vm496_vm5, %v484_v7, %v522_v22  ;;  %v507_v55 = vmul.f32 %v502_v43, %v994_v37  ;;  %v508_v59 = vmul.f32 %v502_v43, %v1005_v46  ;;  %v509_v61 = vmul.f32 %v502_v43, %v1014_v53 }
 0x282   :  { %v531_v48 = vsel %vm498_vm6, %v530_v45, %v525_v44  ;;  %v510_v28 = vmul.f32 %v502_v43, %v1042_v10  ;;  %v511_v24 = vmul.f32 %v502_v43, %v1029_v4  ;;  %v512_v37 = vmul.f32 %v502_v43, %v1037_v17 }
 0x283   :  { %v513_v8 = vmul.f32 %v502_v43, %v1047_v33  ;;  %v514_v53 = vmul.f32 %v502_v43, %v1060_v11  ;;  %v515_v17 = vmul.f32 %v502_v43, %v1070_v50  ;;  %v516_v6 = vmul.f32 %v502_v43, %v1079_v56 }
 0x284   :  { %v528_v47 = vpop.permute.xlu0 %527  ;;  %v517_v16 = vmul.f32 %v502_v43, %v1087_v63  ;;  %v518_v20 = vmul.f32 %v502_v43, %v1094_v5 }
 0x285   :  { %v532_v49 = vsel %vm500_vm7, %v531_v48, %v528_v47 }
 0x286   :  { %v533_v52 = vperm.slane %v532_v49, 0 }
 0x288   :  { %v534_v57 = vadd.f32 %v533_v52, %v503_v15  ;;  %v535_v58 = vadd.f32 %v533_v52, %v504_v38  ;;  %v536_v23 = vadd.f32 %v533_v52, %v505_v51  ;;  %v537_v60 = vadd.f32 %v533_v52, %v506_v54 }
 0x289   :  { %v538_v62 = vadd.f32 %v533_v52, %v507_v55  ;;  %v539_v0 = vadd.f32 %v533_v52, %v508_v59  ;;  %v540_v29 = vadd.f32 %v533_v52, %v509_v61  ;;  %v541_v18 = vadd.f32 %v533_v52, %v510_v28 }
 0x28a   :  { %v550_v1 = vmax.f32 %v534_v57, 0.0  ;;  %v551_v39 = vmax.f32 %v535_v58, 0.0  ;;  %v552_v32 = vmax.f32 %v536_v23, 0.0  ;;  %v553_v2 = vmax.f32 %v537_v60, 0.0 }
 0x28b   :  { %v542_v46 = vadd.f32 %v533_v52, %v511_v24  ;;  %v554_v9 = vmax.f32 %v538_v62, 0.0  ;;  %v543_v4 = vadd.f32 %v533_v52, %v512_v37  ;;  %v555_v10 = vmax.f32 %v539_v0, 0.0 }
 0x28c   :  { %566 = vst.msk [vmem:[%s1201_s5] sm:$0xff] %vm348_vm0, %v550_v1  ;;  %v544_v12 = vadd.f32 %v533_v52, %v513_v8  ;;  %v556_v33 = vmax.f32 %v540_v29, 0.0  ;;  %v545_v13 = vadd.f32 %v533_v52, %v514_v53  ;;  %v557_v11 = vmax.f32 %v541_v18, 0.0 }
 0x28d   :  { %567 = vst.msk [vmem:[%s1201_s5 + $0x8] sm:$0xff] %vm348_vm0, %v551_v39  ;;  %v546_v19 = vadd.f32 %v533_v52, %v515_v17  ;;  %v558_v50 = vmax.f32 %v542_v46, 0.0  ;;  %v547_v21 = vadd.f32 %v533_v52, %v516_v6  ;;  %v559_v56 = vmax.f32 %v543_v4, 0.0 }
 0x28e   :  { %568 = vst.msk [vmem:[%s1201_s5 + $0x10] sm:$0xff] %vm348_vm0, %v552_v32  ;;  %v548_v3 = vadd.f32 %v533_v52, %v517_v16  ;;  %v560_v25 = vmax.f32 %v544_v12, 0.0  ;;  %v549_v63 = vadd.f32 %v533_v52, %v518_v20  ;;  %v561_v26 = vmax.f32 %v545_v13, 0.0 }
 0x28f   :  { %569 = vst.msk [vmem:[%s1201_s5 + $0x18] sm:$0xff] %vm348_vm0, %v553_v2  ;;  %v562_v5 = vmax.f32 %v546_v19, 0.0  ;;  %v563_v27 = vmax.f32 %v547_v21, 0.0 }
 0x290   :  { %570 = vst.msk [vmem:[%s1201_s5 + $0x20] sm:$0xff] %vm348_vm0, %v554_v9  ;;  %v564_v30 = vmax.f32 %v548_v3, 0.0  ;;  %v565_v31 = vmax.f32 %v549_v63, 0.0 }
 0x291   :  { %571 = vst.msk [vmem:[%s1201_s5 + $0x28] sm:$0xff] %vm348_vm0, %v555_v10 }
 0x292   :  { %572 = vst.msk [vmem:[%s1201_s5 + $0x30] sm:$0xff] %vm348_vm0, %v556_v33 }
 0x293   :  { %573 = vst.msk [vmem:[%s1201_s5 + $0x38] sm:$0xff] %vm348_vm0, %v557_v11 }
 0x294   :  { %574 = vst.msk [vmem:[%s1201_s5 + $0x40] sm:$0xff] %vm348_vm0, %v558_v50 }
 0x295   :  { %575 = vst.msk [vmem:[%s1201_s5 + $0x48] sm:$0xff] %vm348_vm0, %v559_v56 }
 0x296   :  { %576 = vst.msk [vmem:[%s1201_s5 + $0x50] sm:$0xff] %vm348_vm0, %v560_v25 }
 0x297   :  { %577 = vst.msk [vmem:[%s1201_s5 + $0x58] sm:$0xff] %vm348_vm0, %v561_v26 }
 0x298   :  { %578 = vst.msk [vmem:[%s1201_s5 + $0x60] sm:$0xff] %vm348_vm0, %v562_v5 }
 0x299   :  { %579 = vst.msk [vmem:[%s1201_s5 + $0x68] sm:$0xff] %vm348_vm0, %v563_v27 }
 0x29a   :  { %580 = vst.msk [vmem:[%s1201_s5 + $0x70] sm:$0xff] %vm348_vm0, %v564_v30 }
 0x29b   :  { %581 = vst.msk [vmem:[%s1201_s5 + $0x78] sm:$0xff] %vm348_vm0, %v565_v31 }

// kernel: cdcgan_g_forward.7
= control target key start
LH: loop header
LB: loop body
LE: loop exit
PB: predicated region body
PF: predicated region fallthrough
CT: control target
= control target key end

     0   :  { %vm571_vm0 = vcmask 97280   ;;  %s1458_s1 = inlined_call_operand.vmem [shape: bf16[128,12], index: 1, kind: input, shape index: {}]   ;;  %s1459_s2 = inlined_call_operand.vmem [shape: f32[1,12], index: 2, kind: input, shape index: {}]   ;;  %s1460_s0 = inlined_call_operand.vmem [shape: bf16[512,128], index: 0, kind: input, shape index: {}]   ;;  %s1461_s3 = inlined_call_operand.vmem [shape: f32[512,12], index: 3, kind: output, shape index: {}]  }
   0x1   :  { %v839_v0 = vld [vmem:[%s1458_s1 + $0x38] sm:$0xff]  ;;  %v838_v1 = vld [vmem:[%s1458_s1 + $0x30] sm:$0xff]  ;;  %v837_v2 = vld [vmem:[%s1458_s1 + $0x28] sm:$0xff] }
   0x2   :  { %338 = vmatpush.bf16.msra.mxu0 %v839_v0  ;;  %840 = vmatpush.bf16.msra.mxu1 %v839_v0  ;;  %v836_v3 = vld [vmem:[%s1458_s1 + $0x20] sm:$0xff]  ;;  %v835_v4 = vld [vmem:[%s1458_s1 + $0x18] sm:$0xff]  ;;  %v834_v5 = vld [vmem:[%s1458_s1 + $0x10] sm:$0xff] }
   0x3   :  { %841 = vmatpush.bf16.msra.mxu2 %v839_v0  ;;  %842 = vmatpush.bf16.msra.mxu3 %v839_v0  ;;  %v833_v6 = vld [vmem:[%s1458_s1 + $0x8] sm:$0xff]  ;;  %v832_v7 = vld [vmem:[%s1458_s1] sm:$0xff]  ;;  %v802_v16 = vld [vmem:[%s1460_s0 + $0x10] sm:$0xff] }
   0x4   :  { %v800_v8 = vld [vmem:[%s1460_s0] sm:$0xff]  ;;  %v801_v12 = vld [vmem:[%s1460_s0 + $0x8] sm:$0xff]  ;;  %v810_v17 = vld [vmem:[%s1460_s0 + $0x50] sm:$0xff] }
   0x5   :  { %v808_v9 = vld [vmem:[%s1460_s0 + $0x40] sm:$0xff]  ;;  %v809_v13 = vld [vmem:[%s1460_s0 + $0x48] sm:$0xff]  ;;  %v818_v18 = vld [vmem:[%s1460_s0 + $0x90] sm:$0xff] }
   0x6   :  { %339 = vmatpush.bf16.msra.mxu0 %v838_v1  ;;  %843 = vmatpush.bf16.msra.mxu1 %v838_v1  ;;  %v816_v10 = vld [vmem:[%s1460_s0 + $0x80] sm:$0xff]  ;;  %v817_v14 = vld [vmem:[%s1460_s0 + $0x88] sm:$0xff]  ;;  %v826_v19 = vld [vmem:[%s1460_s0 + $0xd0] sm:$0xff] }
   0x7   :  { %844 = vmatpush.bf16.msra.mxu2 %v838_v1  ;;  %845 = vmatpush.bf16.msra.mxu3 %v838_v1  ;;  %v824_v11 = vld [vmem:[%s1460_s0 + $0xc0] sm:$0xff]  ;;  %v825_v15 = vld [vmem:[%s1460_s0 + $0xc8] sm:$0xff]  ;;  %v803_v20 = vld [vmem:[%s1460_s0 + $0x18] sm:$0xff] }
   0x8   :  { %v811_v21 = vld [vmem:[%s1460_s0 + $0x58] sm:$0xff]  ;;  %v804_v24 = vld [vmem:[%s1460_s0 + $0x20] sm:$0xff]  ;;  %v805_v28 = vld [vmem:[%s1460_s0 + $0x28] sm:$0xff] }
   0x9   :  { %v819_v22 = vld [vmem:[%s1460_s0 + $0x98] sm:$0xff]  ;;  %v812_v25 = vld [vmem:[%s1460_s0 + $0x60] sm:$0xff]  ;;  %v813_v29 = vld [vmem:[%s1460_s0 + $0x68] sm:$0xff] }
   0xa   :  { %340 = vmatpush.bf16.msra.mxu0 %v837_v2  ;;  %846 = vmatpush.bf16.msra.mxu1 %v837_v2  ;;  %v827_v23 = vld [vmem:[%s1460_s0 + $0xd8] sm:$0xff]  ;;  %v820_v26 = vld [vmem:[%s1460_s0 + $0xa0] sm:$0xff]  ;;  %v821_v30 = vld [vmem:[%s1460_s0 + $0xa8] sm:$0xff] }
   0xb   :  { %847 = vmatpush.bf16.msra.mxu2 %v837_v2  ;;  %848 = vmatpush.bf16.msra.mxu3 %v837_v2  ;;  %v828_v27 = vld [vmem:[%s1460_s0 + $0xe0] sm:$0xff]  ;;  %v829_v31 = vld [vmem:[%s1460_s0 + $0xe8] sm:$0xff]  ;;  %v806_v32 = vld [vmem:[%s1460_s0 + $0x30] sm:$0xff] }
   0xc   :  { %v814_v33 = vld [vmem:[%s1460_s0 + $0x70] sm:$0xff]  ;;  %v807_v36 = vld [vmem:[%s1460_s0 + $0x38] sm:$0xff]  ;;  %v1136_v40 = vld [vmem:[%s1459_s2] ss:$0 sm:$0xff] }
   0xd   :  { %v822_v34 = vld [vmem:[%s1460_s0 + $0xb0] sm:$0xff]  ;;  %v815_v37 = vld [vmem:[%s1460_s0 + $0x78] sm:$0xff] }
   0xe   :  { %341 = vmatpush.bf16.msra.mxu0 %v836_v3  ;;  %849 = vmatpush.bf16.msra.mxu1 %v836_v3  ;;  %v830_v35 = vld [vmem:[%s1460_s0 + $0xf0] sm:$0xff]  ;;  %v823_v38 = vld [vmem:[%s1460_s0 + $0xb8] sm:$0xff] }
   0xf   :  { %850 = vmatpush.bf16.msra.mxu2 %v836_v3  ;;  %851 = vmatpush.bf16.msra.mxu3 %v836_v3  ;;  %v831_v39 = vld [vmem:[%s1460_s0 + $0xf8] sm:$0xff] }
  0x12   :  { %342 = vmatpush.bf16.msra.mxu0 %v835_v4  ;;  %852 = vmatpush.bf16.msra.mxu1 %v835_v4 }
  0x13   :  { %853 = vmatpush.bf16.msra.mxu2 %v835_v4  ;;  %854 = vmatpush.bf16.msra.mxu3 %v835_v4 }
  0x16   :  { %343 = vmatpush.bf16.msra.mxu0 %v834_v5  ;;  %855 = vmatpush.bf16.msra.mxu1 %v834_v5 }
  0x17   :  { %856 = vmatpush.bf16.msra.mxu2 %v834_v5  ;;  %857 = vmatpush.bf16.msra.mxu3 %v834_v5 }
  0x1a   :  { %344 = vmatpush.bf16.msra.mxu0 %v833_v6  ;;  %858 = vmatpush.bf16.msra.mxu1 %v833_v6 }
  0x1b   :  { %859 = vmatpush.bf16.msra.mxu2 %v833_v6  ;;  %860 = vmatpush.bf16.msra.mxu3 %v833_v6 }
  0x1e   :  { %345 = vmatpush.bf16.msra.mxu0 %v832_v7  ;;  %861 = vmatpush.bf16.msra.mxu1 %v832_v7 }
  0x1f   :  { %862 = vmatpush.bf16.msra.mxu2 %v832_v7  ;;  %863 = vmatpush.bf16.msra.mxu3 %v832_v7 }
  0x21   :  { %346 = vmatmul.bf16.vlgmr.msra.gmra.mxu0 %v800_v8  ;;  %386 = vmatmul.bf16.vlgmr.msra.gmra.mxu1 %v808_v9 }
  0x22   :  { %426 = vmatmul.bf16.vlgmr.msra.gmra.mxu2 %v816_v10  ;;  %466 = vmatmul.bf16.vlgmr.msra.gmra.mxu3 %v824_v11 }
  0x31   :  { %351 = vmatmul.bf16.gmra.mxu0 %v801_v12  ;;  %391 = vmatmul.bf16.gmra.mxu1 %v809_v13 }
  0x32   :  { %431 = vmatmul.bf16.gmra.mxu2 %v817_v14  ;;  %471 = vmatmul.bf16.gmra.mxu3 %v825_v15 }
  0x41   :  { %356 = vmatmul.bf16.gmra.mxu0 %v802_v16  ;;  %396 = vmatmul.bf16.gmra.mxu1 %v810_v17 }
  0x42   :  { %436 = vmatmul.bf16.gmra.mxu2 %v818_v18  ;;  %476 = vmatmul.bf16.gmra.mxu3 %v826_v19 }
  0x51   :  { %361 = vmatmul.bf16.gmra.mxu0 %v803_v20  ;;  %401 = vmatmul.bf16.gmra.mxu1 %v811_v21 }
  0x52   :  { %441 = vmatmul.bf16.gmra.mxu2 %v819_v22  ;;  %481 = vmatmul.bf16.gmra.mxu3 %v827_v23 }
  0x61   :  { %366 = vmatmul.bf16.gmra.mxu0 %v804_v24  ;;  %406 = vmatmul.bf16.gmra.mxu1 %v812_v25 }
  0x62   :  { %446 = vmatmul.bf16.gmra.mxu2 %v820_v26  ;;  %486 = vmatmul.bf16.gmra.mxu3 %v828_v27 }
  0x71   :  { %371 = vmatmul.bf16.gmra.mxu0 %v805_v28  ;;  %411 = vmatmul.bf16.gmra.mxu1 %v813_v29 }
  0x72   :  { %451 = vmatmul.bf16.gmra.mxu2 %v821_v30  ;;  %491 = vmatmul.bf16.gmra.mxu3 %v829_v31 }
  0x81   :  { %376 = vmatmul.bf16.gmra.mxu0 %v806_v32  ;;  %416 = vmatmul.bf16.gmra.mxu1 %v814_v33 }
  0x82   :  { %456 = vmatmul.bf16.gmra.mxu2 %v822_v34  ;;  %496 = vmatmul.bf16.gmra.mxu3 %v830_v35 }
  0x91   :  { %381 = vmatmul.bf16.gmra.mxu0 %v807_v36  ;;  %421 = vmatmul.bf16.gmra.mxu1 %v815_v37 }
  0x92   :  { %461 = vmatmul.bf16.gmra.mxu2 %v823_v38  ;;  %501 = vmatmul.bf16.gmra.mxu3 %v831_v39 }
  0x9e   :  { %v347_v41 = vpop.f32.mrf.mxu0  ;;  %v387_v42 = vpop.f32.mrf.mxu1 }
  0x9f   :  { %v348_v43 = vadd.f32 %v1136_v40, %v347_v41  ;;  %v388_v44 = vadd.f32 %v1136_v40, %v387_v42 }
  0xa1   :  { %865 = vtanh.f32 %v348_v43 }
  0xa2   :  { %867 = vtanh.f32 %v388_v44 }
  0xa5   :  { %v427_v45 = vpop.f32.mrf.mxu2  ;;  %v467_v46 = vpop.f32.mrf.mxu3 }
  0xa6   :  { %v428_v47 = vadd.f32 %v1136_v40, %v427_v45  ;;  %v468_v48 = vadd.f32 %v1136_v40, %v467_v46  ;;  %v349_v49 = vpop.f32.mrf.mxu0  ;;  %v389_v50 = vpop.f32.mrf.mxu1 }
  0xa7   :  { %v866_v51 = vpop.eup %865  ;;  %v350_v52 = vadd.f32 %v1136_v40, %v349_v49  ;;  %v390_v53 = vadd.f32 %v1136_v40, %v389_v50 }
  0xa8   :  { %v868_v54 = vpop.eup %867  ;;  %572 = vst.msk [vmem:[%s1461_s3] sm:$0xff] %vm571_vm0, %v866_v51  ;;  %869 = vtanh.f32 %v428_v47 }
  0xa9   :  { %588 = vst.msk [vmem:[%s1461_s3 + $0x80] sm:$0xff] %vm571_vm0, %v868_v54  ;;  %871 = vtanh.f32 %v468_v48 }
  0xaa   :  { %873 = vtanh.f32 %v350_v52 }
  0xab   :  { %875 = vtanh.f32 %v390_v53 }
  0xad   :  { %v429_v55 = vpop.f32.mrf.mxu2  ;;  %v469_v56 = vpop.f32.mrf.mxu3 }
  0xae   :  { %v870_v57 = vpop.eup %869  ;;  %v430_v58 = vadd.f32 %v1136_v40, %v429_v55  ;;  %v470_v59 = vadd.f32 %v1136_v40, %v469_v56  ;;  %v352_v60 = vpop.f32.mrf.mxu0 }
  0xaf   :  { %v392_v61 = vpop.f32.mrf.mxu1  ;;  %v872_v62 = vpop.eup %871  ;;  %604 = vst.msk [vmem:[%s1461_s3 + $0x100] sm:$0xff] %vm571_vm0, %v870_v57  ;;  %v353_v63 = vadd.f32 %v1136_v40, %v352_v60 }
  0xb0   :  { %v393_v0 = vadd.f32 %v1136_v40, %v392_v61  ;;  %v874_v1 = vpop.eup %873  ;;  %620 = vst.msk [vmem:[%s1461_s3 + $0x180] sm:$0xff] %vm571_vm0, %v872_v62  ;;  %877 = vtanh.f32 %v430_v58 }
  0xb1   :  { %v876_v2 = vpop.eup %875  ;;  %573 = vst.msk [vmem:[%s1461_s3 + $0x8] sm:$0xff] %vm571_vm0, %v874_v1  ;;  %879 = vtanh.f32 %v470_v59 }
  0xb2   :  { %589 = vst.msk [vmem:[%s1461_s3 + $0x88] sm:$0xff] %vm571_vm0, %v876_v2  ;;  %881 = vtanh.f32 %v353_v63 }
  0xb3   :  { %883 = vtanh.f32 %v393_v0 }
  0xb5   :  { %v432_v3 = vpop.f32.mrf.mxu2  ;;  %v472_v4 = vpop.f32.mrf.mxu3 }
  0xb6   :  { %v878_v5 = vpop.eup %877  ;;  %v433_v6 = vadd.f32 %v1136_v40, %v432_v3  ;;  %v473_v7 = vadd.f32 %v1136_v40, %v472_v4  ;;  %v354_v8 = vpop.f32.mrf.mxu0 }
  0xb7   :  { %v394_v9 = vpop.f32.mrf.mxu1  ;;  %v880_v10 = vpop.eup %879  ;;  %605 = vst.msk [vmem:[%s1461_s3 + $0x108] sm:$0xff] %vm571_vm0, %v878_v5  ;;  %v355_v11 = vadd.f32 %v1136_v40, %v354_v8 }
  0xb8   :  { %v395_v12 = vadd.f32 %v1136_v40, %v394_v9  ;;  %v882_v13 = vpop.eup %881  ;;  %621 = vst.msk [vmem:[%s1461_s3 + $0x188] sm:$0xff] %vm571_vm0, %v880_v10  ;;  %885 = vtanh.f32 %v433_v6 }
  0xb9   :  { %v884_v14 = vpop.eup %883  ;;  %574 = vst.msk [vmem:[%s1461_s3 + $0x10] sm:$0xff] %vm571_vm0, %v882_v13  ;;  %887 = vtanh.f32 %v473_v7 }
  0xba   :  { %590 = vst.msk [vmem:[%s1461_s3 + $0x90] sm:$0xff] %vm571_vm0, %v884_v14  ;;  %889 = vtanh.f32 %v355_v11 }
  0xbb   :  { %891 = vtanh.f32 %v395_v12 }
  0xbd   :  { %v434_v15 = vpop.f32.mrf.mxu2  ;;  %v474_v16 = vpop.f32.mrf.mxu3 }
  0xbe   :  { %v886_v17 = vpop.eup %885  ;;  %v435_v18 = vadd.f32 %v1136_v40, %v434_v15  ;;  %v475_v19 = vadd.f32 %v1136_v40, %v474_v16  ;;  %v357_v20 = vpop.f32.mrf.mxu0 }
  0xbf   :  { %v397_v21 = vpop.f32.mrf.mxu1  ;;  %v888_v22 = vpop.eup %887  ;;  %606 = vst.msk [vmem:[%s1461_s3 + $0x110] sm:$0xff] %vm571_vm0, %v886_v17  ;;  %v358_v23 = vadd.f32 %v1136_v40, %v357_v20 }
  0xc0   :  { %v398_v24 = vadd.f32 %v1136_v40, %v397_v21  ;;  %v890_v25 = vpop.eup %889  ;;  %622 = vst.msk [vmem:[%s1461_s3 + $0x190] sm:$0xff] %vm571_vm0, %v888_v22  ;;  %893 = vtanh.f32 %v435_v18 }
  0xc1   :  { %v892_v26 = vpop.eup %891  ;;  %575 = vst.msk [vmem:[%s1461_s3 + $0x18] sm:$0xff] %vm571_vm0, %v890_v25  ;;  %895 = vtanh.f32 %v475_v19 }
  0xc2   :  { %591 = vst.msk [vmem:[%s1461_s3 + $0x98] sm:$0xff] %vm571_vm0, %v892_v26  ;;  %897 = vtanh.f32 %v358_v23 }
  0xc3   :  { %899 = vtanh.f32 %v398_v24 }
  0xc5   :  { %v437_v27 = vpop.f32.mrf.mxu2  ;;  %v477_v28 = vpop.f32.mrf.mxu3 }
  0xc6   :  { %v894_v29 = vpop.eup %893  ;;  %v438_v30 = vadd.f32 %v1136_v40, %v437_v27  ;;  %v478_v31 = vadd.f32 %v1136_v40, %v477_v28  ;;  %v359_v32 = vpop.f32.mrf.mxu0 }
  0xc7   :  { %v399_v33 = vpop.f32.mrf.mxu1  ;;  %v896_v34 = vpop.eup %895  ;;  %607 = vst.msk [vmem:[%s1461_s3 + $0x118] sm:$0xff] %vm571_vm0, %v894_v29  ;;  %v360_v35 = vadd.f32 %v1136_v40, %v359_v32 }
  0xc8   :  { %v400_v36 = vadd.f32 %v1136_v40, %v399_v33  ;;  %v898_v37 = vpop.eup %897  ;;  %623 = vst.msk [vmem:[%s1461_s3 + $0x198] sm:$0xff] %vm571_vm0, %v896_v34  ;;  %901 = vtanh.f32 %v438_v30 }
  0xc9   :  { %v900_v38 = vpop.eup %899  ;;  %576 = vst.msk [vmem:[%s1461_s3 + $0x20] sm:$0xff] %vm571_vm0, %v898_v37  ;;  %903 = vtanh.f32 %v478_v31 }
  0xca   :  { %592 = vst.msk [vmem:[%s1461_s3 + $0xa0] sm:$0xff] %vm571_vm0, %v900_v38  ;;  %905 = vtanh.f32 %v360_v35 }
  0xcb   :  { %907 = vtanh.f32 %v400_v36 }
  0xcd   :  { %v439_v39 = vpop.f32.mrf.mxu2  ;;  %v479_v41 = vpop.f32.mrf.mxu3 }
  0xce   :  { %v902_v42 = vpop.eup %901  ;;  %v440_v43 = vadd.f32 %v1136_v40, %v439_v39  ;;  %v480_v44 = vadd.f32 %v1136_v40, %v479_v41  ;;  %v362_v45 = vpop.f32.mrf.mxu0 }
  0xcf   :  { %v402_v46 = vpop.f32.mrf.mxu1  ;;  %v904_v47 = vpop.eup %903  ;;  %608 = vst.msk [vmem:[%s1461_s3 + $0x120] sm:$0xff] %vm571_vm0, %v902_v42  ;;  %v363_v48 = vadd.f32 %v1136_v40, %v362_v45 }
  0xd0   :  { %v403_v49 = vadd.f32 %v1136_v40, %v402_v46  ;;  %v906_v50 = vpop.eup %905  ;;  %624 = vst.msk [vmem:[%s1461_s3 + $0x1a0] sm:$0xff] %vm571_vm0, %v904_v47  ;;  %909 = vtanh.f32 %v440_v43 }
  0xd1   :  { %v908_v51 = vpop.eup %907  ;;  %577 = vst.msk [vmem:[%s1461_s3 + $0x28] sm:$0xff] %vm571_vm0, %v906_v50  ;;  %911 = vtanh.f32 %v480_v44 }
  0xd2   :  { %593 = vst.msk [vmem:[%s1461_s3 + $0xa8] sm:$0xff] %vm571_vm0, %v908_v51  ;;  %913 = vtanh.f32 %v363_v48 }
  0xd3   :  { %915 = vtanh.f32 %v403_v49 }
  0xd5   :  { %v442_v52 = vpop.f32.mrf.mxu2  ;;  %v482_v53 = vpop.f32.mrf.mxu3 }
  0xd6   :  { %v910_v54 = vpop.eup %909  ;;  %v443_v55 = vadd.f32 %v1136_v40, %v442_v52  ;;  %v483_v56 = vadd.f32 %v1136_v40, %v482_v53  ;;  %v364_v57 = vpop.f32.mrf.mxu0 }
  0xd7   :  { %v404_v58 = vpop.f32.mrf.mxu1  ;;  %v912_v59 = vpop.eup %911  ;;  %609 = vst.msk [vmem:[%s1461_s3 + $0x128] sm:$0xff] %vm571_vm0, %v910_v54  ;;  %v365_v60 = vadd.f32 %v1136_v40, %v364_v57 }
  0xd8   :  { %v405_v61 = vadd.f32 %v1136_v40, %v404_v58  ;;  %v914_v62 = vpop.eup %913  ;;  %625 = vst.msk [vmem:[%s1461_s3 + $0x1a8] sm:$0xff] %vm571_vm0, %v912_v59  ;;  %917 = vtanh.f32 %v443_v55 }
  0xd9   :  { %v916_v63 = vpop.eup %915  ;;  %578 = vst.msk [vmem:[%s1461_s3 + $0x30] sm:$0xff] %vm571_vm0, %v914_v62  ;;  %919 = vtanh.f32 %v483_v56 }
  0xda   :  { %594 = vst.msk [vmem:[%s1461_s3 + $0xb0] sm:$0xff] %vm571_vm0, %v916_v63  ;;  %921 = vtanh.f32 %v365_v60 }
  0xdb   :  { %923 = vtanh.f32 %v405_v61 }
  0xdd   :  { %v444_v0 = vpop.f32.mrf.mxu2  ;;  %v484_v1 = vpop.f32.mrf.mxu3 }
  0xde   :  { %v918_v2 = vpop.eup %917  ;;  %v445_v3 = vadd.f32 %v1136_v40, %v444_v0  ;;  %v485_v4 = vadd.f32 %v1136_v40, %v484_v1  ;;  %v367_v5 = vpop.f32.mrf.mxu0 }
  0xdf   :  { %v407_v6 = vpop.f32.mrf.mxu1  ;;  %v920_v7 = vpop.eup %919  ;;  %610 = vst.msk [vmem:[%s1461_s3 + $0x130] sm:$0xff] %vm571_vm0, %v918_v2  ;;  %v368_v8 = vadd.f32 %v1136_v40, %v367_v5 }
  0xe0   :  { %v408_v9 = vadd.f32 %v1136_v40, %v407_v6  ;;  %v922_v10 = vpop.eup %921  ;;  %626 = vst.msk [vmem:[%s1461_s3 + $0x1b0] sm:$0xff] %vm571_vm0, %v920_v7  ;;  %925 = vtanh.f32 %v445_v3 }
  0xe1   :  { %v924_v11 = vpop.eup %923  ;;  %579 = vst.msk [vmem:[%s1461_s3 + $0x38] sm:$0xff] %vm571_vm0, %v922_v10  ;;  %927 = vtanh.f32 %v485_v4 }
  0xe2   :  { %595 = vst.msk [vmem:[%s1461_s3 + $0xb8] sm:$0xff] %vm571_vm0, %v924_v11  ;;  %929 = vtanh.f32 %v368_v8 }
  0xe3   :  { %931 = vtanh.f32 %v408_v9 }
  0xe5   :  { %v447_v12 = vpop.f32.mrf.mxu2  ;;  %v487_v13 = vpop.f32.mrf.mxu3 }
  0xe6   :  { %v926_v14 = vpop.eup %925  ;;  %v448_v15 = vadd.f32 %v1136_v40, %v447_v12  ;;  %v488_v16 = vadd.f32 %v1136_v40, %v487_v13  ;;  %v369_v17 = vpop.f32.mrf.mxu0 }
  0xe7   :  { %v409_v18 = vpop.f32.mrf.mxu1  ;;  %v928_v19 = vpop.eup %927  ;;  %611 = vst.msk [vmem:[%s1461_s3 + $0x138] sm:$0xff] %vm571_vm0, %v926_v14  ;;  %v370_v20 = vadd.f32 %v1136_v40, %v369_v17 }
  0xe8   :  { %v410_v21 = vadd.f32 %v1136_v40, %v409_v18  ;;  %v930_v22 = vpop.eup %929  ;;  %627 = vst.msk [vmem:[%s1461_s3 + $0x1b8] sm:$0xff] %vm571_vm0, %v928_v19  ;;  %933 = vtanh.f32 %v448_v15 }
  0xe9   :  { %v932_v23 = vpop.eup %931  ;;  %580 = vst.msk [vmem:[%s1461_s3 + $0x40] sm:$0xff] %vm571_vm0, %v930_v22  ;;  %935 = vtanh.f32 %v488_v16 }
  0xea   :  { %596 = vst.msk [vmem:[%s1461_s3 + $0xc0] sm:$0xff] %vm571_vm0, %v932_v23  ;;  %937 = vtanh.f32 %v370_v20 }
  0xeb   :  { %939 = vtanh.f32 %v410_v21 }
  0xed   :  { %v449_v24 = vpop.f32.mrf.mxu2  ;;  %v489_v25 = vpop.f32.mrf.mxu3 }
  0xee   :  { %v934_v26 = vpop.eup %933  ;;  %v450_v27 = vadd.f32 %v1136_v40, %v449_v24  ;;  %v490_v28 = vadd.f32 %v1136_v40, %v489_v25  ;;  %v372_v29 = vpop.f32.mrf.mxu0 }
  0xef   :  { %v412_v30 = vpop.f32.mrf.mxu1  ;;  %v936_v31 = vpop.eup %935  ;;  %612 = vst.msk [vmem:[%s1461_s3 + $0x140] sm:$0xff] %vm571_vm0, %v934_v26  ;;  %v373_v32 = vadd.f32 %v1136_v40, %v372_v29 }
  0xf0   :  { %v413_v33 = vadd.f32 %v1136_v40, %v412_v30  ;;  %v938_v34 = vpop.eup %937  ;;  %628 = vst.msk [vmem:[%s1461_s3 + $0x1c0] sm:$0xff] %vm571_vm0, %v936_v31  ;;  %941 = vtanh.f32 %v450_v27 }
  0xf1   :  { %v940_v35 = vpop.eup %939  ;;  %581 = vst.msk [vmem:[%s1461_s3 + $0x48] sm:$0xff] %vm571_vm0, %v938_v34  ;;  %943 = vtanh.f32 %v490_v28 }
  0xf2   :  { %597 = vst.msk [vmem:[%s1461_s3 + $0xc8] sm:$0xff] %vm571_vm0, %v940_v35  ;;  %945 = vtanh.f32 %v373_v32 }
  0xf3   :  { %947 = vtanh.f32 %v413_v33 }
  0xf5   :  { %v452_v36 = vpop.f32.mrf.mxu2  ;;  %v492_v37 = vpop.f32.mrf.mxu3 }
  0xf6   :  { %v942_v38 = vpop.eup %941  ;;  %v453_v39 = vadd.f32 %v1136_v40, %v452_v36  ;;  %v493_v41 = vadd.f32 %v1136_v40, %v492_v37  ;;  %v374_v42 = vpop.f32.mrf.mxu0 }
  0xf7   :  { %v414_v43 = vpop.f32.mrf.mxu1  ;;  %v944_v44 = vpop.eup %943  ;;  %613 = vst.msk [vmem:[%s1461_s3 + $0x148] sm:$0xff] %vm571_vm0, %v942_v38  ;;  %v375_v45 = vadd.f32 %v1136_v40, %v374_v42 }
  0xf8   :  { %v415_v46 = vadd.f32 %v1136_v40, %v414_v43  ;;  %v946_v47 = vpop.eup %945  ;;  %629 = vst.msk [vmem:[%s1461_s3 + $0x1c8] sm:$0xff] %vm571_vm0, %v944_v44  ;;  %949 = vtanh.f32 %v453_v39 }
  0xf9   :  { %v948_v48 = vpop.eup %947  ;;  %582 = vst.msk [vmem:[%s1461_s3 + $0x50] sm:$0xff] %vm571_vm0, %v946_v47  ;;  %951 = vtanh.f32 %v493_v41 }
  0xfa   :  { %598 = vst.msk [vmem:[%s1461_s3 + $0xd0] sm:$0xff] %vm571_vm0, %v948_v48  ;;  %953 = vtanh.f32 %v375_v45 }
  0xfb   :  { %955 = vtanh.f32 %v415_v46 }
  0xfd   :  { %v454_v49 = vpop.f32.mrf.mxu2  ;;  %v494_v50 = vpop.f32.mrf.mxu3 }
  0xfe   :  { %v950_v51 = vpop.eup %949  ;;  %v455_v52 = vadd.f32 %v1136_v40, %v454_v49  ;;  %v495_v53 = vadd.f32 %v1136_v40, %v494_v50  ;;  %v377_v54 = vpop.f32.mrf.mxu0 }
  0xff   :  { %v417_v55 = vpop.f32.mrf.mxu1  ;;  %v952_v56 = vpop.eup %951  ;;  %614 = vst.msk [vmem:[%s1461_s3 + $0x150] sm:$0xff] %vm571_vm0, %v950_v51  ;;  %v378_v57 = vadd.f32 %v1136_v40, %v377_v54 }
 0x100   :  { %v418_v58 = vadd.f32 %v1136_v40, %v417_v55  ;;  %v954_v59 = vpop.eup %953  ;;  %630 = vst.msk [vmem:[%s1461_s3 + $0x1d0] sm:$0xff] %vm571_vm0, %v952_v56  ;;  %957 = vtanh.f32 %v455_v52 }
 0x101   :  { %v956_v60 = vpop.eup %955  ;;  %583 = vst.msk [vmem:[%s1461_s3 + $0x58] sm:$0xff] %vm571_vm0, %v954_v59  ;;  %959 = vtanh.f32 %v495_v53 }
 0x102   :  { %599 = vst.msk [vmem:[%s1461_s3 + $0xd8] sm:$0xff] %vm571_vm0, %v956_v60  ;;  %961 = vtanh.f32 %v378_v57 }
 0x103   :  { %963 = vtanh.f32 %v418_v58 }
 0x105   :  { %v457_v61 = vpop.f32.mrf.mxu2  ;;  %v497_v62 = vpop.f32.mrf.mxu3 }
 0x106   :  { %v958_v63 = vpop.eup %957  ;;  %v458_v0 = vadd.f32 %v1136_v40, %v457_v61  ;;  %v498_v1 = vadd.f32 %v1136_v40, %v497_v62  ;;  %v379_v2 = vpop.f32.mrf.mxu0 }
 0x107   :  { %v419_v3 = vpop.f32.mrf.mxu1  ;;  %v960_v4 = vpop.eup %959  ;;  %615 = vst.msk [vmem:[%s1461_s3 + $0x158] sm:$0xff] %vm571_vm0, %v958_v63  ;;  %v380_v5 = vadd.f32 %v1136_v40, %v379_v2 }
 0x108   :  { %v420_v6 = vadd.f32 %v1136_v40, %v419_v3  ;;  %v962_v7 = vpop.eup %961  ;;  %631 = vst.msk [vmem:[%s1461_s3 + $0x1d8] sm:$0xff] %vm571_vm0, %v960_v4  ;;  %965 = vtanh.f32 %v458_v0 }
 0x109   :  { %v964_v8 = vpop.eup %963  ;;  %584 = vst.msk [vmem:[%s1461_s3 + $0x60] sm:$0xff] %vm571_vm0, %v962_v7  ;;  %967 = vtanh.f32 %v498_v1 }
 0x10a   :  { %600 = vst.msk [vmem:[%s1461_s3 + $0xe0] sm:$0xff] %vm571_vm0, %v964_v8  ;;  %969 = vtanh.f32 %v380_v5 }
 0x10b   :  { %971 = vtanh.f32 %v420_v6 }
 0x10d   :  { %v459_v9 = vpop.f32.mrf.mxu2  ;;  %v499_v10 = vpop.f32.mrf.mxu3 }
 0x10e   :  { %v966_v11 = vpop.eup %965  ;;  %v460_v12 = vadd.f32 %v1136_v40, %v459_v9  ;;  %v500_v13 = vadd.f32 %v1136_v40, %v499_v10  ;;  %v382_v14 = vpop.f32.mrf.mxu0 }
 0x10f   :  { %v422_v15 = vpop.f32.mrf.mxu1  ;;  %v968_v16 = vpop.eup %967  ;;  %616 = vst.msk [vmem:[%s1461_s3 + $0x160] sm:$0xff] %vm571_vm0, %v966_v11  ;;  %v383_v17 = vadd.f32 %v1136_v40, %v382_v14 }
 0x110   :  { %v423_v18 = vadd.f32 %v1136_v40, %v422_v15  ;;  %v970_v19 = vpop.eup %969  ;;  %632 = vst.msk [vmem:[%s1461_s3 + $0x1e0] sm:$0xff] %vm571_vm0, %v968_v16  ;;  %973 = vtanh.f32 %v460_v12 }
 0x111   :  { %v972_v20 = vpop.eup %971  ;;  %585 = vst.msk [vmem:[%s1461_s3 + $0x68] sm:$0xff] %vm571_vm0, %v970_v19  ;;  %975 = vtanh.f32 %v500_v13 }
 0x112   :  { %601 = vst.msk [vmem:[%s1461_s3 + $0xe8] sm:$0xff] %vm571_vm0, %v972_v20  ;;  %977 = vtanh.f32 %v383_v17 }
 0x113   :  { %979 = vtanh.f32 %v423_v18 }
 0x115   :  { %v462_v21 = vpop.f32.mrf.mxu2  ;;  %v502_v22 = vpop.f32.mrf.mxu3 }
 0x116   :  { %v974_v23 = vpop.eup %973  ;;  %v463_v24 = vadd.f32 %v1136_v40, %v462_v21  ;;  %v503_v25 = vadd.f32 %v1136_v40, %v502_v22  ;;  %v384_v26 = vpop.f32.mrf.mxu0 }
 0x117   :  { %v424_v27 = vpop.f32.mrf.mxu1  ;;  %v976_v28 = vpop.eup %975  ;;  %617 = vst.msk [vmem:[%s1461_s3 + $0x168] sm:$0xff] %vm571_vm0, %v974_v23  ;;  %v385_v29 = vadd.f32 %v1136_v40, %v384_v26 }
 0x118   :  { %v425_v30 = vadd.f32 %v1136_v40, %v424_v27  ;;  %v978_v31 = vpop.eup %977  ;;  %633 = vst.msk [vmem:[%s1461_s3 + $0x1e8] sm:$0xff] %vm571_vm0, %v976_v28  ;;  %981 = vtanh.f32 %v463_v24 }
 0x119   :  { %v980_v32 = vpop.eup %979  ;;  %586 = vst.msk [vmem:[%s1461_s3 + $0x70] sm:$0xff] %vm571_vm0, %v978_v31  ;;  %983 = vtanh.f32 %v503_v25 }
 0x11a   :  { %602 = vst.msk [vmem:[%s1461_s3 + $0xf0] sm:$0xff] %vm571_vm0, %v980_v32  ;;  %985 = vtanh.f32 %v385_v29 }
 0x11b   :  { %987 = vtanh.f32 %v425_v30 }
 0x11d   :  { %v464_v33 = vpop.f32.mrf.mxu2  ;;  %v504_v34 = vpop.f32.mrf.mxu3 }
 0x11e   :  { %v982_v35 = vpop.eup %981  ;;  %v465_v36 = vadd.f32 %v1136_v40, %v464_v33  ;;  %v505_v37 = vadd.f32 %v1136_v40, %v504_v34 }
 0x11f   :  { %v984_v38 = vpop.eup %983  ;;  %618 = vst.msk [vmem:[%s1461_s3 + $0x170] sm:$0xff] %vm571_vm0, %v982_v35 }
 0x120   :  { %v986_v39 = vpop.eup %985  ;;  %634 = vst.msk [vmem:[%s1461_s3 + $0x1f0] sm:$0xff] %vm571_vm0, %v984_v38  ;;  %989 = vtanh.f32 %v465_v36 }
 0x121   :  { %v988_v41 = vpop.eup %987  ;;  %587 = vst.msk [vmem:[%s1461_s3 + $0x78] sm:$0xff] %vm571_vm0, %v986_v39  ;;  %991 = vtanh.f32 %v505_v37 }
 0x122   :  { %603 = vst.msk [vmem:[%s1461_s3 + $0xf8] sm:$0xff] %vm571_vm0, %v988_v41 }
 0x126   :  { %v990_v40 = vpop.eup %989 }
 0x127   :  { %v992_v42 = vpop.eup %991  ;;  %619 = vst.msk [vmem:[%s1461_s3 + $0x178] sm:$0xff] %vm571_vm0, %v990_v40 }
 0x128   :  { %635 = vst.msk [vmem:[%s1461_s3 + $0x1f8] sm:$0xff] %vm571_vm0, %v992_v42 }

</bundles_post_ra>
